<compile_context>
chip_gen: v7x
topology: tpu7x:2x2x1
jax: 0.10.0
libtpu: 0.0.40
codegen_flags: <defaults>
</compile_context>

<pallas_src>
import functools

import numpy as np
import jax
import jax.numpy as jnp
from jax.experimental import pallas as pl
from jax.experimental.pallas import tpu as pltpu

LEAKY_SLOPE = 0.01
BN_EPS = 1e-5


# ----------------------------------------------------------------------------
# Host-side helpers: fold kw taps + W-reflection padding into banded matrices so
# the kernel only does lane-dense rank-2 matmuls and leading-axis row slices.
# ----------------------------------------------------------------------------
def _reflect(i, n):
    if i < 0:
        return -i
    if i >= n:
        return 2 * n - 2 - i
    return i


def _banded_conv_weights(w_oihw, w_in, stride):
    """Fold kw taps + W-reflection into (KH, W_in*Cin, W_out*Cout) matrices.

    With an activation flattened as A[h, w*Cin + ci], the conv output is
      out[i, j*Cout + co] = sum_kh  Apad_rows[i*stride + kh, :] @ big[kh]
    """
    cout, cin, ksz, _ = w_oihw.shape
    pad = ksz // 2
    w_out = (w_in + 2 * pad - ksz) // stride + 1
    # route[kw, src_w, j] = 1 iff output column j reads input column src_w at tap kw.
    route = np.zeros((ksz, w_in, w_out), np.float32)
    for j in range(w_out):
        for kw in range(ksz):
            route[kw, _reflect(j * stride + kw - pad, w_in), j] += 1.0
    big = jnp.einsum("ksj,oihk->hsijo", jnp.asarray(route),
                     w_oihw.astype(jnp.float32))
    return big.reshape(ksz, w_in * cin, w_out * cout)


def _tile_channels(v, w_out):
    """(C,) -> (1, W_out*C) so it broadcasts over the flattened (.., W*C) layout."""
    return jnp.tile(v.astype(jnp.float32), w_out).reshape(1, -1)


# ----------------------------------------------------------------------------
# Fused encoder kernel: the whole (small) batch lives in VMEM, activations are
# lane-dense (N, H, W*C), every conv is KH rank-2 MXU matmuls with M = N*h_out.
# ----------------------------------------------------------------------------
def _encoder_kernel(x_ref,
                    w1_ref, b1_ref,
                    wr1_ref, br1_ref, g1_ref, be1_ref,
                    wr2_ref, br2_ref, g2_ref, be2_ref,
                    proj_ref,
                    w2_ref, b2_ref,
                    o_ref, *, ksize, stride, channels, eps):
    n = x_ref.shape[0]

    def reflect_pad_rows(a, pad):
        # Reflection pad along H (axis 1) via static row slices + concat (no matmul).
        if pad == 0:
            return a
        h = a.shape[1]
        pieces = [a[:, r:r + 1, :] for r in range(pad, 0, -1)]        # rows pad..1
        pieces.append(a)
        pieces += [a[:, r:r + 1, :] for r in range(h - 2, h - 2 - pad, -1)]
        return jnp.concatenate(pieces, axis=1)

    def conv_layer(a, w_ref, b_ref, k, s):
        # a: (N, H_in, WC_in); w_ref: (k, WC_in, WC_out) banded (kw + W-reflection folded)
        pad = k // 2
        ap = reflect_pad_rows(a, pad)                     # (N, H_in+2p, WC_in)
        hp = ap.shape[1]
        wc_in = ap.shape[2]
        wc_out = w_ref.shape[2]
        h_out = (hp - k) // s + 1
        acc = None
        for kh in range(k):
            limit = kh + (h_out - 1) * s + 1
            if s == 1:
                rows = ap[:, kh:limit, :]                 # (N, h_out, WC_in)
            else:
                # TODO(synk): stride > 1 path is untested (demo config uses stride=1).
                rows = jax.lax.slice(ap, (0, kh, 0), (n, limit, wc_in), (1, s, 1))
            rows2 = rows.reshape(n * h_out, wc_in)        # batch folded into M
            part = jnp.dot(rows2, w_ref[kh], preferred_element_type=jnp.float32)
            acc = part if acc is None else acc + part
        out = acc.reshape(n, h_out, wc_out) + b_ref[...]
        return jnp.where(out > 0, out, LEAKY_SLOPE * out)  # leaky_relu(0.01)

    def bn_scale_shift(t, g_ref, be_ref):
        # Per-channel train-mode stats over (N, H, W); biased variance; f32.
        # Single pass: sum + sum-of-squares, var = E[x^2] - mean^2.
        nh = t.shape[0] * t.shape[1]
        wc = t.shape[2]
        t2 = t.reshape(nh, wc)
        cnt = float(nh * (wc // channels))
        s1 = jnp.sum(t2, axis=0, keepdims=True)           # (1, WC)
        s2 = jnp.sum(t2 * t2, axis=0, keepdims=True)       # (1, WC)
        mean = jnp.dot(s1, proj_ref[...], preferred_element_type=jnp.float32) / cnt
        ex2 = jnp.dot(s2, proj_ref[...], preferred_element_type=jnp.float32) / cnt
        var = ex2 - mean * mean
        scale = g_ref[...] * jax.lax.rsqrt(var + eps)
        shift = be_ref[...] - mean * scale
        # TODO(synk): running_mean/running_var updates are stateful and not reproduced.
        return scale, shift

    # conv1 (ConvLayer, leaky_relu)
    y = conv_layer(x_ref[...], w1_ref, b1_ref, ksize, stride)

    # ResidualBlock: relu(bn1(convlayer(x))) ; bn2(convlayer(.)) + residual ; relu
    res = y
    t = conv_layer(y, wr1_ref, br1_ref, 3, 1)
    sc1, sh1 = bn_scale_shift(t, g1_ref, be1_ref)
    t = jnp.maximum(t * sc1 + sh1, 0.0)
    t = conv_layer(t, wr2_ref, br2_ref, 3, 1)
    sc2, sh2 = bn_scale_shift(t, g2_ref, be2_ref)
    t = jnp.maximum(t * sc2 + sh2 + res, 0.0)

    # conv2 (ConvLayer, leaky_relu) -> lane-dense (N, H2, W2*Cout) store
    o_ref[...] = conv_layer(t, w2_ref, b2_ref, ksize, stride).astype(o_ref.dtype)


# ----------------------------------------------------------------------------
# Encoder forward: weight repacking in the wrapper, one fused pallas_call.
# ----------------------------------------------------------------------------
def encoder_forward(x_nchw, params, *, kernel_size, stride):
    n, cin, h, w = x_nchw.shape
    cout = params["conv1_w"].shape[0]
    pad = kernel_size // 2
    h1 = (h + 2 * pad - kernel_size) // stride + 1
    w1 = (w + 2 * pad - kernel_size) // stride + 1
    h2 = (h1 + 2 * pad - kernel_size) // stride + 1
    w2 = (w1 + 2 * pad - kernel_size) // stride + 1

    # NCHW -> lane-dense (N, H, W*Cin)
    x_flat = jnp.transpose(x_nchw, (0, 2, 3, 1)).reshape(n, h, w * cin)
    x_flat = x_flat.astype(jnp.float32)

    # Lane-dense per-channel projector: proj[i, j] = 1 iff i % C == j % C.
    fold = np.tile(np.eye(cout, dtype=np.float32), (w1, 1))   # (W1*C, C)
    proj = jnp.asarray(fold @ fold.T)                          # (W1*C, W1*C)

    operands = (
        x_flat,
        _banded_conv_weights(params["conv1_w"], w, stride),
        _tile_channels(params["conv1_b"], w1),
        _banded_conv_weights(params["res_c1_w"], w1, 1),
        _tile_channels(params["res_c1_b"], w1),
        _tile_channels(params["bn1_g"], w1),
        _tile_channels(params["bn1_b"], w1),
        _banded_conv_weights(params["res_c2_w"], w1, 1),
        _tile_channels(params["res_c2_b"], w1),
        _tile_channels(params["bn2_g"], w1),
        _tile_channels(params["bn2_b"], w1),
        proj,
        _banded_conv_weights(params["conv2_w"], w1, stride),
        _tile_channels(params["conv2_b"], w2),
    )

    kernel = functools.partial(_encoder_kernel, ksize=kernel_size,
                               stride=stride, channels=cout, eps=BN_EPS)
    vmem = pl.BlockSpec(memory_space=pltpu.MemorySpace.VMEM)
    out_flat = pl.pallas_call(
        kernel,
        out_shape=jax.ShapeDtypeStruct((n, h2, w2 * cout), jnp.float32),
        in_specs=[vmem] * len(operands),
        out_specs=vmem,
    )(*operands)

    return jnp.transpose(out_flat.reshape(n, h2, w2, cout), (0, 3, 1, 2))  # -> NCHW


# ----------------------------------------------------------------------------
# Pure-JAX reference (same math as the PyTorch module) for a correctness check.
# ----------------------------------------------------------------------------
def _ref_conv_layer(x_nhwc, w_oihw, b, k, s):
    p = k // 2
    xp = jnp.pad(x_nhwc, ((0, 0), (p, p), (p, p), (0, 0)), mode="reflect")
    y = jax.lax.conv_general_dilated(
        xp, jnp.transpose(w_oihw, (2, 3, 1, 0)).astype(jnp.float32),
        window_strides=(s, s), padding="VALID",
        dimension_numbers=("NHWC", "HWIO", "NHWC"),
        precision=jax.lax.Precision.HIGHEST)
    y = y + b.reshape(1, 1, 1, -1)
    return jnp.where(y > 0, y, LEAKY_SLOPE * y)


def _ref_bn(x, g, b):
    mean = jnp.mean(x, axis=(0, 1, 2), keepdims=True)
    var = jnp.mean((x - mean) ** 2, axis=(0, 1, 2), keepdims=True)
    return ((x - mean) * jax.lax.rsqrt(var + BN_EPS) * g.reshape(1, 1, 1, -1)
            + b.reshape(1, 1, 1, -1))


def encoder_reference(x_nchw, params, *, kernel_size, stride):
    x = jnp.transpose(x_nchw, (0, 2, 3, 1)).astype(jnp.float32)
    x = _ref_conv_layer(x, params["conv1_w"], params["conv1_b"], kernel_size, stride)
    r = x
    y = _ref_conv_layer(x, params["res_c1_w"], params["res_c1_b"], 3, 1)
    y = jnp.maximum(_ref_bn(y, params["bn1_g"], params["bn1_b"]), 0.0)
    y = _ref_conv_layer(y, params["res_c2_w"], params["res_c2_b"], 3, 1)
    y = jnp.maximum(_ref_bn(y, params["bn2_g"], params["bn2_b"]) + r, 0.0)
    y = _ref_conv_layer(y, params["conv2_w"], params["conv2_b"], kernel_size, stride)
    return jnp.transpose(y, (0, 3, 1, 2))


def init_params(key, in_channels, out_channels, kernel_size):
    ks = jax.random.split(key, 10)

    def conv_w(k, cout, cin, ksz):
        return 0.1 * jax.random.normal(k, (cout, cin, ksz, ksz), jnp.float32)

    def conv_b(k, cout):
        return 0.01 * jax.random.normal(k, (cout,), jnp.float32)

    c = out_channels
    return {
        "conv1_w": conv_w(ks[0], c, in_channels, kernel_size),
        "conv1_b": conv_b(ks[1], c),
        "res_c1_w": conv_w(ks[2], c, c, 3),
        "res_c1_b": conv_b(ks[3], c),
        "res_c2_w": conv_w(ks[4], c, c, 3),
        "res_c2_b": conv_b(ks[5], c),
        "conv2_w": conv_w(ks[6], c, c, kernel_size),
        "conv2_b": conv_b(ks[7], c),
        "bn1_g": jnp.ones((c,), jnp.float32) + 0.05 * jax.random.normal(ks[8], (c,)),
        "bn1_b": 0.05 * jax.random.normal(ks[9], (c,)),
        "bn2_g": jnp.ones((c,), jnp.float32),
        "bn2_b": jnp.zeros((c,), jnp.float32),
    }


if __name__ == "__main__":
    in_channels, out_channels, kernel_size, stride = 4, 8, 3, 1
    N, H, W = 2, 16, 16

    key = jax.random.PRNGKey(0)
    k_x, k_p = jax.random.split(key)
    x = jax.random.normal(k_x, (N, in_channels, H, W), jnp.float32)   # NCHW like PyTorch
    params = init_params(k_p, in_channels, out_channels, kernel_size)

    out = encoder_forward(x, params, kernel_size=kernel_size, stride=stride)
    out = jax.block_until_ready(out)

    assert out.shape == (N, out_channels, H, W), out.shape
    assert bool(jnp.all(jnp.isfinite(out)))

    ref = encoder_reference(x, params, kernel_size=kernel_size, stride=stride)
    max_err = float(jnp.max(jnp.abs(out - ref)))
    assert max_err < 2e-2, f"mismatch vs reference: max abs err {max_err}"

    print("KERNEL_OK")
</pallas_src>

<mosaic_0001>
module attributes {stable_mosaic.version = 11 : i64} {
  func.func @_encoder_kernel(%arg0: memref<2x16x64xf32, #tpu.memory_space<vmem>>, %arg1: memref<3x64x128xf32, #tpu.memory_space<vmem>>, %arg2: memref<1x128xf32, #tpu.memory_space<vmem>>, %arg3: memref<3x128x128xf32, #tpu.memory_space<vmem>>, %arg4: memref<1x128xf32, #tpu.memory_space<vmem>>, %arg5: memref<1x128xf32, #tpu.memory_space<vmem>>, %arg6: memref<1x128xf32, #tpu.memory_space<vmem>>, %arg7: memref<3x128x128xf32, #tpu.memory_space<vmem>>, %arg8: memref<1x128xf32, #tpu.memory_space<vmem>>, %arg9: memref<1x128xf32, #tpu.memory_space<vmem>>, %arg10: memref<1x128xf32, #tpu.memory_space<vmem>>, %arg11: memref<128x128xf32, #tpu.memory_space<vmem>>, %arg12: memref<3x128x128xf32, #tpu.memory_space<vmem>>, %arg13: memref<1x128xf32, #tpu.memory_space<vmem>>, %arg14: memref<2x16x128xf32, #tpu.memory_space<vmem>>) attributes {dimension_semantics = [], scalar_prefetch = 0 : i64, scratch_operands = 0 : i64, tpu.core_type = #tpu.core_type<tc>} {
    %c0 = arith.constant 0 : index
    %c0_0 = arith.constant 0 : index
    %c0_1 = arith.constant 0 : index
    %0 = vector.load %arg0[%c0, %c0_0, %c0_1] : memref<2x16x64xf32, #tpu.memory_space<vmem>>, vector<2x16x64xf32>
    %1 = vector.extract_strided_slice %0 {offsets = [0, 1, 0], sizes = [2, 1, 64], strides = [1, 1, 1]} : vector<2x16x64xf32> to vector<2x1x64xf32>
    %2 = vector.extract_strided_slice %0 {offsets = [0, 14, 0], sizes = [2, 1, 64], strides = [1, 1, 1]} : vector<2x16x64xf32> to vector<2x1x64xf32>
    %3 = tpu.concatenate %1, %0, %2 in 1 : vector<2x1x64xf32>, vector<2x16x64xf32>, vector<2x1x64xf32> -> vector<2x18x64xf32>
    %4 = vector.extract_strided_slice %3 {offsets = [0, 0, 0], sizes = [2, 16, 64], strides = [1, 1, 1]} : vector<2x18x64xf32> to vector<2x16x64xf32>
    %5 = vector.shape_cast %4 : vector<2x16x64xf32> to vector<32x64xf32>
    %c0_2 = arith.constant 0 : index
    %c0_3 = arith.constant 0 : index
    %c0_4 = arith.constant 0 : index
    %6 = vector.load %arg1[%c0_2, %c0_3, %c0_4] : memref<3x64x128xf32, #tpu.memory_space<vmem>>, vector<1x64x128xf32>
    %7 = vector.shape_cast %6 : vector<1x64x128xf32> to vector<64x128xf32>
    %cst = arith.constant dense<0.000000e+00> : vector<32x128xf32>
    %8 = tpu.matmul %5, %7, %cst {dimension_numbers = #tpu.dot_dimension_numbers<[1], [0], [0], [1], [0, 0, 1, 1], [], []>} : vector<32x64xf32>, vector<64x128xf32>, vector<32x128xf32> -> vector<32x128xf32>
    %9 = vector.extract_strided_slice %3 {offsets = [0, 1, 0], sizes = [2, 16, 64], strides = [1, 1, 1]} : vector<2x18x64xf32> to vector<2x16x64xf32>
    %10 = vector.shape_cast %9 : vector<2x16x64xf32> to vector<32x64xf32>
    %c1 = arith.constant 1 : index
    %c0_5 = arith.constant 0 : index
    %c0_6 = arith.constant 0 : index
    %11 = vector.load %arg1[%c1, %c0_5, %c0_6] : memref<3x64x128xf32, #tpu.memory_space<vmem>>, vector<1x64x128xf32>
    %12 = vector.shape_cast %11 : vector<1x64x128xf32> to vector<64x128xf32>
    %cst_7 = arith.constant dense<0.000000e+00> : vector<32x128xf32>
    %13 = tpu.matmul %10, %12, %cst_7 {dimension_numbers = #tpu.dot_dimension_numbers<[1], [0], [0], [1], [0, 0, 1, 1], [], []>} : vector<32x64xf32>, vector<64x128xf32>, vector<32x128xf32> -> vector<32x128xf32>
    %14 = arith.addf %8, %13 : vector<32x128xf32>
    %15 = vector.extract_strided_slice %3 {offsets = [0, 2, 0], sizes = [2, 16, 64], strides = [1, 1, 1]} : vector<2x18x64xf32> to vector<2x16x64xf32>
    %16 = vector.shape_cast %15 : vector<2x16x64xf32> to vector<32x64xf32>
    %c2 = arith.constant 2 : index
    %c0_8 = arith.constant 0 : index
    %c0_9 = arith.constant 0 : index
    %17 = vector.load %arg1[%c2, %c0_8, %c0_9] : memref<3x64x128xf32, #tpu.memory_space<vmem>>, vector<1x64x128xf32>
    %18 = vector.shape_cast %17 : vector<1x64x128xf32> to vector<64x128xf32>
    %cst_10 = arith.constant dense<0.000000e+00> : vector<32x128xf32>
    %19 = tpu.matmul %16, %18, %cst_10 {dimension_numbers = #tpu.dot_dimension_numbers<[1], [0], [0], [1], [0, 0, 1, 1], [], []>} : vector<32x64xf32>, vector<64x128xf32>, vector<32x128xf32> -> vector<32x128xf32>
    %20 = arith.addf %14, %19 : vector<32x128xf32>
    %21 = vector.shape_cast %20 : vector<32x128xf32> to vector<2x16x128xf32>
    %c0_11 = arith.constant 0 : index
    %c0_12 = arith.constant 0 : index
    %22 = vector.load %arg2[%c0_11, %c0_12] : memref<1x128xf32, #tpu.memory_space<vmem>>, vector<1x128xf32>
    %23 = vector.shape_cast %22 : vector<1x128xf32> to vector<1x1x128xf32>
    %24 = vector.broadcast %23 : vector<1x1x128xf32> to vector<2x16x128xf32>
    %25 = arith.addf %21, %24 : vector<2x16x128xf32>
    %cst_13 = arith.constant 0.000000e+00 : f32
    %26 = vector.broadcast %cst_13 : f32 to vector<2x16x128xf32>
    %27 = arith.cmpf ogt, %25, %26 : vector<2x16x128xf32>
    %cst_14 = arith.constant 0.00999999977 : f32
    %28 = vector.broadcast %cst_14 : f32 to vector<2x16x128xf32>
    %29 = arith.mulf %28, %25 : vector<2x16x128xf32>
    %30 = arith.select %27, %25, %29 : vector<2x16x128xi1>, vector<2x16x128xf32>
    %31 = vector.extract_strided_slice %30 {offsets = [0, 1, 0], sizes = [2, 1, 128], strides = [1, 1, 1]} : vector<2x16x128xf32> to vector<2x1x128xf32>
    %32 = vector.extract_strided_slice %30 {offsets = [0, 14, 0], sizes = [2, 1, 128], strides = [1, 1, 1]} : vector<2x16x128xf32> to vector<2x1x128xf32>
    %33 = tpu.concatenate %31, %30, %32 in 1 : vector<2x1x128xf32>, vector<2x16x128xf32>, vector<2x1x128xf32> -> vector<2x18x128xf32>
    %34 = vector.extract_strided_slice %33 {offsets = [0, 0, 0], sizes = [2, 16, 128], strides = [1, 1, 1]} : vector<2x18x128xf32> to vector<2x16x128xf32>
    %35 = vector.shape_cast %34 : vector<2x16x128xf32> to vector<32x128xf32>
    %c0_15 = arith.constant 0 : index
    %c0_16 = arith.constant 0 : index
    %c0_17 = arith.constant 0 : index
    %36 = vector.load %arg3[%c0_15, %c0_16, %c0_17] : memref<3x128x128xf32, #tpu.memory_space<vmem>>, vector<1x128x128xf32>
    %37 = vector.shape_cast %36 : vector<1x128x128xf32> to vector<128x128xf32>
    %cst_18 = arith.constant dense<0.000000e+00> : vector<32x128xf32>
    %38 = tpu.matmul %35, %37, %cst_18 {dimension_numbers = #tpu.dot_dimension_numbers<[1], [0], [0], [1], [0, 0, 1, 1], [], []>} : vector<32x128xf32>, vector<128x128xf32>, vector<32x128xf32> -> vector<32x128xf32>
    %39 = vector.extract_strided_slice %33 {offsets = [0, 1, 0], sizes = [2, 16, 128], strides = [1, 1, 1]} : vector<2x18x128xf32> to vector<2x16x128xf32>
    %40 = vector.shape_cast %39 : vector<2x16x128xf32> to vector<32x128xf32>
    %c1_19 = arith.constant 1 : index
    %c0_20 = arith.constant 0 : index
    %c0_21 = arith.constant 0 : index
    %41 = vector.load %arg3[%c1_19, %c0_20, %c0_21] : memref<3x128x128xf32, #tpu.memory_space<vmem>>, vector<1x128x128xf32>
    %42 = vector.shape_cast %41 : vector<1x128x128xf32> to vector<128x128xf32>
    %cst_22 = arith.constant dense<0.000000e+00> : vector<32x128xf32>
    %43 = tpu.matmul %40, %42, %cst_22 {dimension_numbers = #tpu.dot_dimension_numbers<[1], [0], [0], [1], [0, 0, 1, 1], [], []>} : vector<32x128xf32>, vector<128x128xf32>, vector<32x128xf32> -> vector<32x128xf32>
    %44 = arith.addf %38, %43 : vector<32x128xf32>
    %45 = vector.extract_strided_slice %33 {offsets = [0, 2, 0], sizes = [2, 16, 128], strides = [1, 1, 1]} : vector<2x18x128xf32> to vector<2x16x128xf32>
    %46 = vector.shape_cast %45 : vector<2x16x128xf32> to vector<32x128xf32>
    %c2_23 = arith.constant 2 : index
    %c0_24 = arith.constant 0 : index
    %c0_25 = arith.constant 0 : index
    %47 = vector.load %arg3[%c2_23, %c0_24, %c0_25] : memref<3x128x128xf32, #tpu.memory_space<vmem>>, vector<1x128x128xf32>
    %48 = vector.shape_cast %47 : vector<1x128x128xf32> to vector<128x128xf32>
    %cst_26 = arith.constant dense<0.000000e+00> : vector<32x128xf32>
    %49 = tpu.matmul %46, %48, %cst_26 {dimension_numbers = #tpu.dot_dimension_numbers<[1], [0], [0], [1], [0, 0, 1, 1], [], []>} : vector<32x128xf32>, vector<128x128xf32>, vector<32x128xf32> -> vector<32x128xf32>
    %50 = arith.addf %44, %49 : vector<32x128xf32>
    %51 = vector.shape_cast %50 : vector<32x128xf32> to vector<2x16x128xf32>
    %c0_27 = arith.constant 0 : index
    %c0_28 = arith.constant 0 : index
    %52 = vector.load %arg4[%c0_27, %c0_28] : memref<1x128xf32, #tpu.memory_space<vmem>>, vector<1x128xf32>
    %53 = vector.shape_cast %52 : vector<1x128xf32> to vector<1x1x128xf32>
    %54 = vector.broadcast %53 : vector<1x1x128xf32> to vector<2x16x128xf32>
    %55 = arith.addf %51, %54 : vector<2x16x128xf32>
    %cst_29 = arith.constant 0.000000e+00 : f32
    %56 = vector.broadcast %cst_29 : f32 to vector<2x16x128xf32>
    %57 = arith.cmpf ogt, %55, %56 : vector<2x16x128xf32>
    %cst_30 = arith.constant 0.00999999977 : f32
    %58 = vector.broadcast %cst_30 : f32 to vector<2x16x128xf32>
    %59 = arith.mulf %58, %55 : vector<2x16x128xf32>
    %60 = arith.select %57, %55, %59 : vector<2x16x128xi1>, vector<2x16x128xf32>
    %61 = vector.shape_cast %60 : vector<2x16x128xf32> to vector<32x128xf32>
    %cst_31 = arith.constant dense<0.000000e+00> : vector<128xf32>
    %62 = vector.multi_reduction <add>, %61, %cst_31 [0] : vector<32x128xf32> to vector<128xf32>
    %63 = vector.shape_cast %62 : vector<128xf32> to vector<1x128xf32>
    %64 = arith.mulf %61, %61 : vector<32x128xf32>
    %cst_32 = arith.constant dense<0.000000e+00> : vector<128xf32>
    %65 = vector.multi_reduction <add>, %64, %cst_32 [0] : vector<32x128xf32> to vector<128xf32>
    %66 = vector.shape_cast %65 : vector<128xf32> to vector<1x128xf32>
    %c0_33 = arith.constant 0 : index
    %c0_34 = arith.constant 0 : index
    %67 = vector.load %arg11[%c0_33, %c0_34] : memref<128x128xf32, #tpu.memory_space<vmem>>, vector<128x128xf32>
    %cst_35 = arith.constant dense<0.000000e+00> : vector<1x128xf32>
    %68 = tpu.matmul %63, %67, %cst_35 {dimension_numbers = #tpu.dot_dimension_numbers<[1], [0], [0], [1], [0, 0, 1, 1], [], []>} : vector<1x128xf32>, vector<128x128xf32>, vector<1x128xf32> -> vector<1x128xf32>
    %cst_36 = arith.constant 5.120000e+02 : f32
    %69 = vector.broadcast %cst_36 : f32 to vector<1x128xf32>
    %70 = arith.divf %68, %69 : vector<1x128xf32>
    %c0_37 = arith.constant 0 : index
    %c0_38 = arith.constant 0 : index
    %71 = vector.load %arg11[%c0_37, %c0_38] : memref<128x128xf32, #tpu.memory_space<vmem>>, vector<128x128xf32>
    %cst_39 = arith.constant dense<0.000000e+00> : vector<1x128xf32>
    %72 = tpu.matmul %66, %71, %cst_39 {dimension_numbers = #tpu.dot_dimension_numbers<[1], [0], [0], [1], [0, 0, 1, 1], [], []>} : vector<1x128xf32>, vector<128x128xf32>, vector<1x128xf32> -> vector<1x128xf32>
    %cst_40 = arith.constant 5.120000e+02 : f32
    %73 = vector.broadcast %cst_40 : f32 to vector<1x128xf32>
    %74 = arith.divf %72, %73 : vector<1x128xf32>
    %75 = arith.mulf %70, %70 : vector<1x128xf32>
    %76 = arith.subf %74, %75 : vector<1x128xf32>
    %c0_41 = arith.constant 0 : index
    %c0_42 = arith.constant 0 : index
    %77 = vector.load %arg5[%c0_41, %c0_42] : memref<1x128xf32, #tpu.memory_space<vmem>>, vector<1x128xf32>
    %cst_43 = arith.constant 9.99999974E-6 : f32
    %78 = vector.broadcast %cst_43 : f32 to vector<1x128xf32>
    %79 = arith.addf %76, %78 : vector<1x128xf32>
    %80 = math.rsqrt %79 : vector<1x128xf32>
    %81 = arith.mulf %77, %80 : vector<1x128xf32>
    %c0_44 = arith.constant 0 : index
    %c0_45 = arith.constant 0 : index
    %82 = vector.load %arg6[%c0_44, %c0_45] : memref<1x128xf32, #tpu.memory_space<vmem>>, vector<1x128xf32>
    %83 = arith.mulf %70, %81 : vector<1x128xf32>
    %84 = arith.subf %82, %83 : vector<1x128xf32>
    %85 = vector.shape_cast %81 : vector<1x128xf32> to vector<1x1x128xf32>
    %86 = vector.broadcast %85 : vector<1x1x128xf32> to vector<2x16x128xf32>
    %87 = arith.mulf %60, %86 : vector<2x16x128xf32>
    %88 = vector.shape_cast %84 : vector<1x128xf32> to vector<1x1x128xf32>
    %89 = vector.broadcast %88 : vector<1x1x128xf32> to vector<2x16x128xf32>
    %90 = arith.addf %87, %89 : vector<2x16x128xf32>
    %cst_46 = arith.constant 0.000000e+00 : f32
    %91 = vector.broadcast %cst_46 : f32 to vector<2x16x128xf32>
    %92 = arith.maximumf %90, %91 : vector<2x16x128xf32>
    %93 = vector.extract_strided_slice %92 {offsets = [0, 1, 0], sizes = [2, 1, 128], strides = [1, 1, 1]} : vector<2x16x128xf32> to vector<2x1x128xf32>
    %94 = vector.extract_strided_slice %92 {offsets = [0, 14, 0], sizes = [2, 1, 128], strides = [1, 1, 1]} : vector<2x16x128xf32> to vector<2x1x128xf32>
    %95 = tpu.concatenate %93, %92, %94 in 1 : vector<2x1x128xf32>, vector<2x16x128xf32>, vector<2x1x128xf32> -> vector<2x18x128xf32>
    %96 = vector.extract_strided_slice %95 {offsets = [0, 0, 0], sizes = [2, 16, 128], strides = [1, 1, 1]} : vector<2x18x128xf32> to vector<2x16x128xf32>
    %97 = vector.shape_cast %96 : vector<2x16x128xf32> to vector<32x128xf32>
    %c0_47 = arith.constant 0 : index
    %c0_48 = arith.constant 0 : index
    %c0_49 = arith.constant 0 : index
    %98 = vector.load %arg7[%c0_47, %c0_48, %c0_49] : memref<3x128x128xf32, #tpu.memory_space<vmem>>, vector<1x128x128xf32>
    %99 = vector.shape_cast %98 : vector<1x128x128xf32> to vector<128x128xf32>
    %cst_50 = arith.constant dense<0.000000e+00> : vector<32x128xf32>
    %100 = tpu.matmul %97, %99, %cst_50 {dimension_numbers = #tpu.dot_dimension_numbers<[1], [0], [0], [1], [0, 0, 1, 1], [], []>} : vector<32x128xf32>, vector<128x128xf32>, vector<32x128xf32> -> vector<32x128xf32>
    %101 = vector.extract_strided_slice %95 {offsets = [0, 1, 0], sizes = [2, 16, 128], strides = [1, 1, 1]} : vector<2x18x128xf32> to vector<2x16x128xf32>
    %102 = vector.shape_cast %101 : vector<2x16x128xf32> to vector<32x128xf32>
    %c1_51 = arith.constant 1 : index
    %c0_52 = arith.constant 0 : index
    %c0_53 = arith.constant 0 : index
    %103 = vector.load %arg7[%c1_51, %c0_52, %c0_53] : memref<3x128x128xf32, #tpu.memory_space<vmem>>, vector<1x128x128xf32>
    %104 = vector.shape_cast %103 : vector<1x128x128xf32> to vector<128x128xf32>
    %cst_54 = arith.constant dense<0.000000e+00> : vector<32x128xf32>
    %105 = tpu.matmul %102, %104, %cst_54 {dimension_numbers = #tpu.dot_dimension_numbers<[1], [0], [0], [1], [0, 0, 1, 1], [], []>} : vector<32x128xf32>, vector<128x128xf32>, vector<32x128xf32> -> vector<32x128xf32>
    %106 = arith.addf %100, %105 : vector<32x128xf32>
    %107 = vector.extract_strided_slice %95 {offsets = [0, 2, 0], sizes = [2, 16, 128], strides = [1, 1, 1]} : vector<2x18x128xf32> to vector<2x16x128xf32>
    %108 = vector.shape_cast %107 : vector<2x16x128xf32> to vector<32x128xf32>
    %c2_55 = arith.constant 2 : index
    %c0_56 = arith.constant 0 : index
    %c0_57 = arith.constant 0 : index
    %109 = vector.load %arg7[%c2_55, %c0_56, %c0_57] : memref<3x128x128xf32, #tpu.memory_space<vmem>>, vector<1x128x128xf32>
    %110 = vector.shape_cast %109 : vector<1x128x128xf32> to vector<128x128xf32>
    %cst_58 = arith.constant dense<0.000000e+00> : vector<32x128xf32>
    %111 = tpu.matmul %108, %110, %cst_58 {dimension_numbers = #tpu.dot_dimension_numbers<[1], [0], [0], [1], [0, 0, 1, 1], [], []>} : vector<32x128xf32>, vector<128x128xf32>, vector<32x128xf32> -> vector<32x128xf32>
    %112 = arith.addf %106, %111 : vector<32x128xf32>
    %113 = vector.shape_cast %112 : vector<32x128xf32> to vector<2x16x128xf32>
    %c0_59 = arith.constant 0 : index
    %c0_60 = arith.constant 0 : index
    %114 = vector.load %arg8[%c0_59, %c0_60] : memref<1x128xf32, #tpu.memory_space<vmem>>, vector<1x128xf32>
    %115 = vector.shape_cast %114 : vector<1x128xf32> to vector<1x1x128xf32>
    %116 = vector.broadcast %115 : vector<1x1x128xf32> to vector<2x16x128xf32>
    %117 = arith.addf %113, %116 : vector<2x16x128xf32>
    %cst_61 = arith.constant 0.000000e+00 : f32
    %118 = vector.broadcast %cst_61 : f32 to vector<2x16x128xf32>
    %119 = arith.cmpf ogt, %117, %118 : vector<2x16x128xf32>
    %cst_62 = arith.constant 0.00999999977 : f32
    %120 = vector.broadcast %cst_62 : f32 to vector<2x16x128xf32>
    %121 = arith.mulf %120, %117 : vector<2x16x128xf32>
    %122 = arith.select %119, %117, %121 : vector<2x16x128xi1>, vector<2x16x128xf32>
    %123 = vector.shape_cast %122 : vector<2x16x128xf32> to vector<32x128xf32>
    %cst_63 = arith.constant dense<0.000000e+00> : vector<128xf32>
    %124 = vector.multi_reduction <add>, %123, %cst_63 [0] : vector<32x128xf32> to vector<128xf32>
    %125 = vector.shape_cast %124 : vector<128xf32> to vector<1x128xf32>
    %126 = arith.mulf %123, %123 : vector<32x128xf32>
    %cst_64 = arith.constant dense<0.000000e+00> : vector<128xf32>
    %127 = vector.multi_reduction <add>, %126, %cst_64 [0] : vector<32x128xf32> to vector<128xf32>
    %128 = vector.shape_cast %127 : vector<128xf32> to vector<1x128xf32>
    %c0_65 = arith.constant 0 : index
    %c0_66 = arith.constant 0 : index
    %129 = vector.load %arg11[%c0_65, %c0_66] : memref<128x128xf32, #tpu.memory_space<vmem>>, vector<128x128xf32>
    %cst_67 = arith.constant dense<0.000000e+00> : vector<1x128xf32>
    %130 = tpu.matmul %125, %129, %cst_67 {dimension_numbers = #tpu.dot_dimension_numbers<[1], [0], [0], [1], [0, 0, 1, 1], [], []>} : vector<1x128xf32>, vector<128x128xf32>, vector<1x128xf32> -> vector<1x128xf32>
    %cst_68 = arith.constant 5.120000e+02 : f32
    %131 = vector.broadcast %cst_68 : f32 to vector<1x128xf32>
    %132 = arith.divf %130, %131 : vector<1x128xf32>
    %c0_69 = arith.constant 0 : index
    %c0_70 = arith.constant 0 : index
    %133 = vector.load %arg11[%c0_69, %c0_70] : memref<128x128xf32, #tpu.memory_space<vmem>>, vector<128x128xf32>
    %cst_71 = arith.constant dense<0.000000e+00> : vector<1x128xf32>
    %134 = tpu.matmul %128, %133, %cst_71 {dimension_numbers = #tpu.dot_dimension_numbers<[1], [0], [0], [1], [0, 0, 1, 1], [], []>} : vector<1x128xf32>, vector<128x128xf32>, vector<1x128xf32> -> vector<1x128xf32>
    %cst_72 = arith.constant 5.120000e+02 : f32
    %135 = vector.broadcast %cst_72 : f32 to vector<1x128xf32>
    %136 = arith.divf %134, %135 : vector<1x128xf32>
    %137 = arith.mulf %132, %132 : vector<1x128xf32>
    %138 = arith.subf %136, %137 : vector<1x128xf32>
    %c0_73 = arith.constant 0 : index
    %c0_74 = arith.constant 0 : index
    %139 = vector.load %arg9[%c0_73, %c0_74] : memref<1x128xf32, #tpu.memory_space<vmem>>, vector<1x128xf32>
    %cst_75 = arith.constant 9.99999974E-6 : f32
    %140 = vector.broadcast %cst_75 : f32 to vector<1x128xf32>
    %141 = arith.addf %138, %140 : vector<1x128xf32>
    %142 = math.rsqrt %141 : vector<1x128xf32>
    %143 = arith.mulf %139, %142 : vector<1x128xf32>
    %c0_76 = arith.constant 0 : index
    %c0_77 = arith.constant 0 : index
    %144 = vector.load %arg10[%c0_76, %c0_77] : memref<1x128xf32, #tpu.memory_space<vmem>>, vector<1x128xf32>
    %145 = arith.mulf %132, %143 : vector<1x128xf32>
    %146 = arith.subf %144, %145 : vector<1x128xf32>
    %147 = vector.shape_cast %143 : vector<1x128xf32> to vector<1x1x128xf32>
    %148 = vector.broadcast %147 : vector<1x1x128xf32> to vector<2x16x128xf32>
    %149 = arith.mulf %122, %148 : vector<2x16x128xf32>
    %150 = vector.shape_cast %146 : vector<1x128xf32> to vector<1x1x128xf32>
    %151 = vector.broadcast %150 : vector<1x1x128xf32> to vector<2x16x128xf32>
    %152 = arith.addf %149, %151 : vector<2x16x128xf32>
    %153 = arith.addf %152, %30 : vector<2x16x128xf32>
    %cst_78 = arith.constant 0.000000e+00 : f32
    %154 = vector.broadcast %cst_78 : f32 to vector<2x16x128xf32>
    %155 = arith.maximumf %153, %154 : vector<2x16x128xf32>
    %156 = vector.extract_strided_slice %155 {offsets = [0, 1, 0], sizes = [2, 1, 128], strides = [1, 1, 1]} : vector<2x16x128xf32> to vector<2x1x128xf32>
    %157 = vector.extract_strided_slice %155 {offsets = [0, 14, 0], sizes = [2, 1, 128], strides = [1, 1, 1]} : vector<2x16x128xf32> to vector<2x1x128xf32>
    %158 = tpu.concatenate %156, %155, %157 in 1 : vector<2x1x128xf32>, vector<2x16x128xf32>, vector<2x1x128xf32> -> vector<2x18x128xf32>
    %159 = vector.extract_strided_slice %158 {offsets = [0, 0, 0], sizes = [2, 16, 128], strides = [1, 1, 1]} : vector<2x18x128xf32> to vector<2x16x128xf32>
    %160 = vector.shape_cast %159 : vector<2x16x128xf32> to vector<32x128xf32>
    %c0_79 = arith.constant 0 : index
    %c0_80 = arith.constant 0 : index
    %c0_81 = arith.constant 0 : index
    %161 = vector.load %arg12[%c0_79, %c0_80, %c0_81] : memref<3x128x128xf32, #tpu.memory_space<vmem>>, vector<1x128x128xf32>
    %162 = vector.shape_cast %161 : vector<1x128x128xf32> to vector<128x128xf32>
    %cst_82 = arith.constant dense<0.000000e+00> : vector<32x128xf32>
    %163 = tpu.matmul %160, %162, %cst_82 {dimension_numbers = #tpu.dot_dimension_numbers<[1], [0], [0], [1], [0, 0, 1, 1], [], []>} : vector<32x128xf32>, vector<128x128xf32>, vector<32x128xf32> -> vector<32x128xf32>
    %164 = vector.extract_strided_slice %158 {offsets = [0, 1, 0], sizes = [2, 16, 128], strides = [1, 1, 1]} : vector<2x18x128xf32> to vector<2x16x128xf32>
    %165 = vector.shape_cast %164 : vector<2x16x128xf32> to vector<32x128xf32>
    %c1_83 = arith.constant 1 : index
    %c0_84 = arith.constant 0 : index
    %c0_85 = arith.constant 0 : index
    %166 = vector.load %arg12[%c1_83, %c0_84, %c0_85] : memref<3x128x128xf32, #tpu.memory_space<vmem>>, vector<1x128x128xf32>
    %167 = vector.shape_cast %166 : vector<1x128x128xf32> to vector<128x128xf32>
    %cst_86 = arith.constant dense<0.000000e+00> : vector<32x128xf32>
    %168 = tpu.matmul %165, %167, %cst_86 {dimension_numbers = #tpu.dot_dimension_numbers<[1], [0], [0], [1], [0, 0, 1, 1], [], []>} : vector<32x128xf32>, vector<128x128xf32>, vector<32x128xf32> -> vector<32x128xf32>
    %169 = arith.addf %163, %168 : vector<32x128xf32>
    %170 = vector.extract_strided_slice %158 {offsets = [0, 2, 0], sizes = [2, 16, 128], strides = [1, 1, 1]} : vector<2x18x128xf32> to vector<2x16x128xf32>
    %171 = vector.shape_cast %170 : vector<2x16x128xf32> to vector<32x128xf32>
    %c2_87 = arith.constant 2 : index
    %c0_88 = arith.constant 0 : index
    %c0_89 = arith.constant 0 : index
    %172 = vector.load %arg12[%c2_87, %c0_88, %c0_89] : memref<3x128x128xf32, #tpu.memory_space<vmem>>, vector<1x128x128xf32>
    %173 = vector.shape_cast %172 : vector<1x128x128xf32> to vector<128x128xf32>
    %cst_90 = arith.constant dense<0.000000e+00> : vector<32x128xf32>
    %174 = tpu.matmul %171, %173, %cst_90 {dimension_numbers = #tpu.dot_dimension_numbers<[1], [0], [0], [1], [0, 0, 1, 1], [], []>} : vector<32x128xf32>, vector<128x128xf32>, vector<32x128xf32> -> vector<32x128xf32>
    %175 = arith.addf %169, %174 : vector<32x128xf32>
    %176 = vector.shape_cast %175 : vector<32x128xf32> to vector<2x16x128xf32>
    %c0_91 = arith.constant 0 : index
    %c0_92 = arith.constant 0 : index
    %177 = vector.load %arg13[%c0_91, %c0_92] : memref<1x128xf32, #tpu.memory_space<vmem>>, vector<1x128xf32>
    %178 = vector.shape_cast %177 : vector<1x128xf32> to vector<1x1x128xf32>
    %179 = vector.broadcast %178 : vector<1x1x128xf32> to vector<2x16x128xf32>
    %180 = arith.addf %176, %179 : vector<2x16x128xf32>
    %cst_93 = arith.constant 0.000000e+00 : f32
    %181 = vector.broadcast %cst_93 : f32 to vector<2x16x128xf32>
    %182 = arith.cmpf ogt, %180, %181 : vector<2x16x128xf32>
    %cst_94 = arith.constant 0.00999999977 : f32
    %183 = vector.broadcast %cst_94 : f32 to vector<2x16x128xf32>
    %184 = arith.mulf %183, %180 : vector<2x16x128xf32>
    %185 = arith.select %182, %180, %184 : vector<2x16x128xi1>, vector<2x16x128xf32>
    %c0_95 = arith.constant 0 : index
    %c0_96 = arith.constant 0 : index
    %c0_97 = arith.constant 0 : index
    %186 = vector.load %arg14[%c0_95, %c0_96, %c0_97] : memref<2x16x128xf32, #tpu.memory_space<vmem>>, vector<2x16x128xf32>
    tpu.vector_store %arg14[%c0_95, %c0_96, %c0_97], %185 {strides = array<i32>} : memref<2x16x128xf32, #tpu.memory_space<vmem>>, vector<2x16x128xf32>,
    return
  }
}

</mosaic_0001>

<bundles_post_ra>
// kernel: tpu_custom_call.1
= control target key start
LH: loop header
LB: loop body
LE: loop exit
PB: predicated region body
PF: predicated region fallthrough
CT: control target
= control target key end

     0   :  { %19 = vsyncpa [#allocation3], 0  ;;  %s4206_s0 = inlined_call_operand.hbm [shape: f32[2,16,64], index: 0, kind: input, shape index: {}]   ;;  %s4207_s1 = inlined_call_operand.hbm [shape: f32[3,64,128], index: 1, kind: input, shape index: {}]   ;;  %s4208_s2 = inlined_call_operand.vmem [shape: f32[1,128], index: 2, kind: input, shape index: {}]   ;;  %s4209_s3 = inlined_call_operand.hbm [shape: f32[3,128,128], index: 3, kind: input, shape index: {}]   ;;  %s4210_s4 = inlined_call_operand.vmem [shape: f32[1,128], index: 4, kind: input, shape index: {}]   ;;  %s4211_s5 = inlined_call_operand.vmem [shape: f32[1,128], index: 5, kind: input, shape index: {}]   ;;  %s4212_s6 = inlined_call_operand.vmem [shape: f32[1,128], index: 6, kind: input, shape index: {}]   ;;  %s4213_s7 = inlined_call_operand.hbm [shape: f32[3,128,128], index: 7, kind: input, shape index: {}]   ;;  %s4214_s8 = inlined_call_operand.vmem [shape: f32[1,128], index: 8, kind: input, shape index: {}]   ;;  %s4215_s9 = inlined_call_operand.vmem [shape: f32[1,128], index: 9, kind: input, shape index: {}]   ;;  %s4216_s10 = inlined_call_operand.vmem [shape: f32[1,128], index: 10, kind: input, shape index: {}]   ;;  %s4217_s11 = inlined_call_operand.hbm [shape: f32[128,128], index: 11, kind: input, shape index: {}]   ;;  %s4218_s12 = inlined_call_operand.hbm [shape: f32[3,128,128], index: 12, kind: input, shape index: {}]   ;;  %s4219_s13 = inlined_call_operand.vmem [shape: f32[1,128], index: 13, kind: input, shape index: {}]   ;;  %s4220_s14 = inlined_call_operand.hbm [shape: f32[2,16,128], index: 14, kind: output, shape index: {}]  }
   0x1   :  { %20 = vsyncpa [#allocation6], 0 }
   0x2   :  { %21 = vsyncpa [#allocation9], 0 }
   0x3   :  { %22 = vsyncpa [#allocation12], 0 }
   0x4   :  { %23 = vsyncpa [#allocation4], 0  ;;  %s3627_s29 = smov [#allocation5]   ;;  %s3628_s15 = smov [#allocation8]  }
   0x5   :  { %s41_s30 = sshll.u32 %s3627_s29, 4  ;;  %s73_s16 = sshll.u32 %s3628_s15, 4  ;;  %s42_s30 = int_to_ptr.vmem [resolvable:$true] %s41_s30  ;;  %s3714_s16 = int_to_ptr.vmem [resolvable:$true] %s73_s16 }
   0x6   :  { %s3463_s19 = scalar_lea.hbm %s4207_s1, 3072 }
   0x7   :  { %p3464_p0 = scmp.ne.s32.totalorder %s4207_s1, %s3463_s19  ;;  %p3467_p1 = scmp.lt.u32.totalorder %s3463_s19, %s4207_s1 }
   0x9   :  { %p3469_p2 = pnand %p3467_p1, %p3464_p0 }
   0xb   :  { %3472 = shalt.err (!%p3469_p2)
}
   0xc   :  { %s3473_s24 = scalar_lea.vmem %s42_s30, 3072  ;;  %p3478_p4 = scmp.lt.s32.totalorder %s42_s30, %s42_s30 }
   0xd   :  { %p3474_p3 = scmp.ne.s32.totalorder %s42_s30, %s3473_s24  ;;  %p3479_p5 = scmp.lt.s32.totalorder %s3473_s24, %s3473_s24 }
   0xf   :  { %p3480_p6 = por %p3479_p5, %p3478_p4 }
  0x11   :  { %p3481_p7 = pnand %p3480_p6, %p3474_p3 }
  0x13   :  { %3484 = shalt.err (!%p3481_p7)
}
  0x14   :  { %s3629_s25 = smov 128   ;;  %s3630_s26 = smov 8  }
  0x15   :  { %47 = dma.hbm_to_vmem [thread:$0]  %s4207_s1, 3072, %s42_s30, [#allocation6], %s3629_s25, %s3629_s25, %s3630_s26  }
  0x16   :  { %s3485_s17 = scalar_lea.hbm %s4213_s7, 6144 }
  0x17   :  { %p3486_p8 = scmp.ne.s32.totalorder %s4213_s7, %s3485_s17  ;;  %p3489_p9 = scmp.lt.u32.totalorder %s3485_s17, %s4213_s7 }
  0x19   :  { %p3491_p10 = pnand %p3489_p9, %p3486_p8 }
  0x1b   :  { %3494 = shalt.err (!%p3491_p10)
}
  0x1c   :  { %s3495_s22 = scalar_lea.vmem %s3714_s16, 6144  ;;  %p3500_p12 = scmp.lt.s32.totalorder %s3714_s16, %s3714_s16 }
  0x1d   :  { %p3496_p11 = scmp.ne.s32.totalorder %s3714_s16, %s3495_s22  ;;  %p3501_p13 = scmp.lt.s32.totalorder %s3495_s22, %s3495_s22 }
  0x1f   :  { %p3502_p0 = por %p3501_p13, %p3500_p12 }
  0x21   :  { %p3503_p1 = pnand %p3502_p0, %p3496_p11 }
  0x23   :  { %3506 = shalt.err (!%p3503_p1)
}
  0x24   :  { %79 = dma.hbm_to_vmem [thread:$0]  %s4213_s7, 6144, %s3714_s16, [#allocation9], %s3629_s25, %s3629_s25, %s3630_s26  }
  0x25   :  { %s3631_s23 = smov [#allocation2]   ;;  %s3632_s27 = smov [#allocation7]  }
  0x26   :  { %s29_s24 = sshll.u32 %s3631_s23, 4  ;;  %s55_s28 = sshll.u32 %s3632_s27, 4  ;;  %s30_s24 = int_to_ptr.vmem [resolvable:$true] %s29_s24  ;;  %s3751_s28 = int_to_ptr.vmem [resolvable:$true] %s55_s28 }
  0x27   :  { %s3507_s17 = scalar_lea.hbm %s4206_s0, 512 }
  0x28   :  { %p3508_p2 = scmp.ne.s32.totalorder %s4206_s0, %s3507_s17  ;;  %p3511_p3 = scmp.lt.u32.totalorder %s3507_s17, %s4206_s0 }
  0x2a   :  { %p3513_p4 = pnand %p3511_p3, %p3508_p2 }
  0x2c   :  { %3516 = shalt.err (!%p3513_p4)
}
  0x2d   :  { %s3517_s7 = scalar_lea.vmem %s30_s24, 512  ;;  %p3522_p6 = scmp.lt.s32.totalorder %s30_s24, %s30_s24 }
  0x2e   :  { %p3518_p5 = scmp.ne.s32.totalorder %s30_s24, %s3517_s7  ;;  %p3523_p7 = scmp.lt.s32.totalorder %s3517_s7, %s3517_s7 }
  0x30   :  { %p3524_p8 = por %p3523_p7, %p3522_p6 }
  0x32   :  { %p3525_p9 = pnand %p3524_p8, %p3518_p5 }
  0x34   :  { %3528 = shalt.err (!%p3525_p9)
}
  0x35   :  { %35 = dma.hbm_to_vmem [thread:$0]  %s4206_s0, 512, %s30_s24, [#allocation3], %s3629_s25, %s3629_s25, %s3630_s26  }
  0x36   :  { %s3529_s23 = scalar_lea.hbm %s4209_s3, 6144 }
  0x37   :  { %p3530_p10 = scmp.ne.s32.totalorder %s4209_s3, %s3529_s23  ;;  %p3533_p11 = scmp.lt.u32.totalorder %s3529_s23, %s4209_s3 }
  0x39   :  { %p3535_p12 = pnand %p3533_p11, %p3530_p10 }
  0x3b   :  { %3538 = shalt.err (!%p3535_p12)
}
  0x3c   :  { %s3539_s18 = scalar_lea.vmem %s3751_s28, 6144  ;;  %p3544_p0 = scmp.lt.s32.totalorder %s3751_s28, %s3751_s28 }
  0x3d   :  { %p3540_p13 = scmp.ne.s32.totalorder %s3751_s28, %s3539_s18  ;;  %p3545_p1 = scmp.lt.s32.totalorder %s3539_s18, %s3539_s18 }
  0x3f   :  { %p3546_p2 = por %p3545_p1, %p3544_p0 }
  0x41   :  { %p3547_p3 = pnand %p3546_p2, %p3540_p13 }
  0x43   :  { %3550 = shalt.err (!%p3547_p3)
}
  0x44   :  { %61 = dma.hbm_to_vmem [thread:$0]  %s4209_s3, 6144, %s3751_s28, [#allocation6], %s3629_s25, %s3629_s25, %s3630_s26  }
  0x45   :  { %s3633_s19 = smov [#allocation10]   ;;  %s3634_s21 = smov [#allocation11]  }
  0x46   :  { %s91_s20 = sshll.u32 %s3633_s19, 4  ;;  %s103_s7 = sshll.u32 %s3634_s21, 4  ;;  %s92_s20 = int_to_ptr.vmem [resolvable:$true] %s91_s20  ;;  %s3788_s7 = int_to_ptr.vmem [resolvable:$true] %s103_s7 }
  0x47   :  { %s3551_s1 = scalar_lea.hbm %s4217_s11, 2048 }
  0x48   :  { %p3552_p4 = scmp.ne.s32.totalorder %s4217_s11, %s3551_s1  ;;  %p3555_p5 = scmp.lt.u32.totalorder %s3551_s1, %s4217_s11 }
  0x4a   :  { %p3557_p6 = pnand %p3555_p5, %p3552_p4 }
  0x4c   :  { %3560 = shalt.err (!%p3557_p6)
}
  0x4d   :  { %s3561_s3 = scalar_lea.vmem %s92_s20, 2048  ;;  %p3566_p8 = scmp.lt.s32.totalorder %s92_s20, %s92_s20 }
  0x4e   :  { %p3562_p7 = scmp.ne.s32.totalorder %s92_s20, %s3561_s3  ;;  %p3567_p9 = scmp.lt.s32.totalorder %s3561_s3, %s3561_s3 }
  0x50   :  { %p3568_p10 = por %p3567_p9, %p3566_p8 }
  0x52   :  { %p3569_p11 = pnand %p3568_p10, %p3562_p7 }
  0x54   :  { %3572 = shalt.err (!%p3569_p11)
}
  0x55   :  { %97 = dma.hbm_to_vmem [thread:$0]  %s4217_s11, 2048, %s92_s20, [#allocation9], %s3629_s25, %s3629_s25, %s3630_s26  }
  0x56   :  { %s3573_s0 = scalar_lea.hbm %s4218_s12, 6144 }
  0x57   :  { %p3574_p12 = scmp.ne.s32.totalorder %s4218_s12, %s3573_s0  ;;  %p3577_p13 = scmp.lt.u32.totalorder %s3573_s0, %s4218_s12 }
  0x59   :  { %p3579_p0 = pnand %p3577_p13, %p3574_p12 }
  0x5b   :  { %3582 = shalt.err (!%p3579_p0)
}
  0x5c   :  { %s3583_s22 = scalar_lea.vmem %s3788_s7, 6144  ;;  %p3588_p2 = scmp.lt.s32.totalorder %s3788_s7, %s3788_s7 }
  0x5d   :  { %p3584_p1 = scmp.ne.s32.totalorder %s3788_s7, %s3583_s22  ;;  %p3589_p3 = scmp.lt.s32.totalorder %s3583_s22, %s3583_s22 }
  0x5f   :  { %p3590_p4 = por %p3589_p3, %p3588_p2 }
  0x61   :  { %p3591_p5 = pnand %p3590_p4, %p3584_p1 }
  0x63   :  { %3594 = shalt.err (!%p3591_p5)
}
  0x64   :  { %109 = dma.hbm_to_vmem [thread:$0]  %s4218_s12, 6144, %s3788_s7, [#allocation12], %s3629_s25, %s3629_s25, %s3630_s26  }
  0x65   :  { %3617 = dma.done.wait [#allocation3], 512  }
  0x66   :  { %3618 = vsyncadd [#allocation3], 4294966784 }
  0x67   :  { %3619 = dma.done.wait [#allocation6], 9216  }
  0x68   :  { %3620 = vsyncadd [#allocation6], 4294958080 }
  0x69   :  { %3621 = dma.done.wait [#allocation9], 8192  }
  0x6a   :  { %3622 = vsyncadd [#allocation9], 4294959104 }
  0x6b   :  { %3623 = dma.done.wait [#allocation12], 6144  }
  0x6c   :  { %3624 = vsyncadd [#allocation12], 4294961152  ;;  %v185_v0 = vld [vmem:[#allocation5 + $0x40] sm:$0xff]  ;;  %v186_v1 = vld [vmem:[#allocation5 + $0x48] sm:$0xff]  ;;  %vm142_vm0 = vcmask 1040384   ;;  %vm173_vm1 = vcmask 1046528  }
  0x6d   :  { %v187_v2 = vld [vmem:[#allocation5 + $0x50] sm:$0xff]  ;;  %v2983_v3 = vpack.c.bf16 %v186_v1, %v185_v0  ;;  %v188_v4 = vld [vmem:[#allocation5 + $0x58] sm:$0xff]  ;;  %v189_v6 = vld [vmem:[#allocation5 + $0x60] sm:$0xff]  ;;  %vm193_vm2 = vcmask 523264   ;;  %vm380_vm3 = vcmask 1045504   ;;  %vm3636_vm8 = vmmov 0  }
  0x6e   :  { %v2987_v5 = vpack.c.bf16 %v188_v4, %v187_v2  ;;  %v190_v7 = vld [vmem:[#allocation5 + $0x68] sm:$0xff]  ;;  %v130_v8 = vld [vmem:[#allocation2] sm:$0xff]  ;;  %v132_v16 = vld [vmem:[#allocation2 + $0x10] sm:$0xff]  ;;  %s3638_s15 = smov [#allocation13]  }
  0x6f   :  { %2984 = vmatprep.subr.bf16.mxu0 %v2983_v3  ;;  %v131_v9 = vld [vmem:[#allocation2 + $0x8] sm:$0xff]  ;;  %v136_v10 = vrot.slane %v130_v8, 1  ;;  %v143_v11 = vrot.slane %v130_v8, 7  ;;  %v2991_v13 = vpack.c.bf16 %v190_v7, %v189_v6  ;;  %v133_v17 = vld [vmem:[#allocation2 + $0x18] sm:$0xff]  ;;  %v191_v18 = vld [vmem:[#allocation5 + $0x70] sm:$0xff]  ;;  %v137_v23 = vrot.slane %v132_v16, 1 }
  0x70   :  { %2986 = vmatpush3.bf16.msra.mxu0 %v2983_v3  ;;  %v144_v12 = vrot.slane %v131_v9, 7  ;;  %v153_v15 = vrot.slane %v131_v9, 5  ;;  %v192_v19 = vld [vmem:[#allocation5 + $0x78] sm:$0xff]  ;;  %v146_v24 = vrot.slane %v132_v16, 7  ;;  %v147_v25 = vrot.slane %v133_v17, 7  ;;  %v161_v28 = vld [vmem:[#allocation5] sm:$0xff] }
  0x71   :  { %2988 = vmatprep.subr.bf16.mxu0 %v2987_v5  ;;  %v3826_v14 = vsel %vm142_vm0, %v136_v10, %v143_v11  ;;  %v2995_v26 = vpack.c.bf16 %v192_v19, %v191_v18  ;;  %v162_v29 = vld [vmem:[#allocation5 + $0x8] sm:$0xff]  ;;  %v154_v31 = vrot.slane %v133_v17, 5  ;;  %v583_v34 = vld [vmem:[#allocation7 + $0x80] sm:$0xff]  ;;  %v585_v36 = vld [vmem:[#allocation7 + $0x90] sm:$0xff]  ;;  %s2120_s17 = sshll.u32 %s3638_s15, 4  ;;  %s2121_s17 = int_to_ptr.vmem [resolvable:$true] %s2120_s17 }
  0x72   :  { %v3829_v20 = vsel %vm142_vm0, %v143_v11, %v144_v12  ;;  %v174_v21 = vrot.slane %v3826_v14, 1  ;;  %v3835_v30 = vsel %vm142_vm0, %v144_v12, %v153_v15  ;;  %v3839_v32 = vsel %vm142_vm0, %v146_v24, %v147_v25  ;;  %v584_v35 = vld [vmem:[#allocation7 + $0x88] sm:$0xff]  ;;  %v586_v37 = vld [vmem:[#allocation7 + $0x98] sm:$0xff]  ;;  %v163_v44 = vld [vmem:[#allocation5 + $0x10] sm:$0xff]  ;;  %p3600_p7 = scmp.lt.s32.totalorder %s2121_s17, %s2121_s17 }
  0x73   :  { %v175_v22 = vrot.slane %v3829_v20, 1  ;;  %v3842_v33 = vsel %vm142_vm0, %v137_v23, %v146_v24  ;;  %v2999_v38 = vpack.c.bf16 %v162_v29, %v161_v28  ;;  %v177_v39 = vrot.slane %v3835_v30, 1  ;;  %v164_v45 = vld [vmem:[#allocation5 + $0x18] sm:$0xff]  ;;  %v587_v47 = vld [vmem:[#allocation7 + $0xa0] sm:$0xff]  ;;  %v588_v48 = vld [vmem:[#allocation7 + $0xa8] sm:$0xff] }
  0x74   :  { %2990 = vmatpush3.bf16.msra.mxu0 %v2987_v5  ;;  %v179_v40 = vrot.slane %v3842_v33, 1  ;;  %v180_v41 = vrot.slane %v3839_v32, 1  ;;  %v3848_v42 = vsel %vm142_vm0, %v147_v25, %v154_v31  ;;  %v3031_v43 = vpack.c.bf16 %v584_v35, %v583_v34  ;;  %v165_v53 = vld [vmem:[#allocation5 + $0x20] sm:$0xff]  ;;  %v166_v54 = vld [vmem:[#allocation5 + $0x28] sm:$0xff]  ;;  %v589_v56 = vld [vmem:[#allocation7 + $0xb0] sm:$0xff] }
  0x75   :  { %2992 = vmatprep.subr.bf16.mxu0 %v2991_v13  ;;  %v176_v27 = vsel %vm173_vm1, %v174_v21, %v175_v22  ;;  %v3035_v46 = vpack.c.bf16 %v586_v37, %v585_v36  ;;  %v178_v49 = vsel %vm173_vm1, %v175_v22, %v177_v39  ;;  %v182_v50 = vrot.slane %v3848_v42, 1  ;;  %v590_v57 = vld [vmem:[#allocation7 + $0xb8] sm:$0xff]  ;;  %v167_v60 = vld [vmem:[#allocation5 + $0x30] sm:$0xff]  ;;  %v591_v63 = vld [vmem:[#allocation7 + $0xc0] sm:$0xff] }
  0x76   :  { %2451 = vmatprep.mubr.msk.f32.mxu0 %vm193_vm2, %v176_v27  ;;  %3032 = vmatprep.subr.bf16.mxu1 %v3031_v43  ;;  %v3003_v51 = vpack.c.bf16 %v164_v45, %v163_v44  ;;  %v181_v52 = vsel %vm173_vm1, %v179_v40, %v180_v41  ;;  %v3039_v55 = vpack.c.bf16 %v588_v48, %v587_v47  ;;  %v168_v61 = vld [vmem:[#allocation5 + $0x38] sm:$0xff]  ;;  %v592_v0 = vld [vmem:[#allocation7 + $0xc8] sm:$0xff]  ;;  %v392_v2 = vld [vmem:[#allocation5 + $0x80] sm:$0xff]  ;;  %v381_v9 = vrot.slane %v3826_v14, 2 }
  0x77   :  { %3034 = vmatpush3.bf16.msra.mxu1 %v3031_v43  ;;  %v183_v58 = vsel %vm173_vm1, %v180_v41, %v182_v50  ;;  %v3007_v59 = vpack.c.bf16 %v166_v54, %v165_v53  ;;  %v3043_v62 = vpack.c.bf16 %v590_v57, %v589_v56  ;;  %v3011_v1 = vpack.c.bf16 %v168_v61, %v167_v60  ;;  %v393_v3 = vld [vmem:[#allocation5 + $0x88] sm:$0xff]  ;;  %v394_v6 = vld [vmem:[#allocation5 + $0x90] sm:$0xff]  ;;  %v395_v7 = vld [vmem:[#allocation5 + $0x98] sm:$0xff] }
  0x78   :  { %2994 = vmatpush3.bf16.msra.mxu0 %v2991_v13  ;;  %3036 = vmatprep.subr.bf16.mxu1 %v3035_v46  ;;  %v3047_v4 = vpack.c.bf16 %v592_v0, %v591_v63  ;;  %v3015_v5 = vpack.c.bf16 %v393_v3, %v392_v2  ;;  %v3019_v8 = vpack.c.bf16 %v395_v7, %v394_v6  ;;  %v382_v10 = vrot.slane %v3829_v20, 2  ;;  %v396_v11 = vld [vmem:[#allocation5 + $0xa0] sm:$0xff]  ;;  %v397_v12 = vld [vmem:[#allocation5 + $0xa8] sm:$0xff]  ;;  %v398_v16 = vld [vmem:[#allocation5 + $0xb0] sm:$0xff] }
  0x79   :  { %2996 = vmatprep.subr.bf16.mxu0 %v2995_v26  ;;  %v3023_v13 = vpack.c.bf16 %v397_v12, %v396_v11  ;;  %v399_v17 = vld [vmem:[#allocation5 + $0xb8] sm:$0xff]  ;;  %v384_v18 = vrot.slane %v3835_v30, 2  ;;  %v386_v19 = vrot.slane %v3842_v33, 2  ;;  %v389_v22 = vrot.slane %v3848_v42, 2  ;;  %v593_v25 = vld [vmem:[#allocation7 + $0xd0] sm:$0xff]  ;;  %v595_v28 = vld [vmem:[#allocation7 + $0xe0] sm:$0xff] }
  0x7a   :  { %v383_v15 = vsel %vm380_vm3, %v381_v9, %v382_v10  ;;  %v596_v29 = vld [vmem:[#allocation7 + $0xe8] sm:$0xff]  ;;  %v597_v31 = vld [vmem:[#allocation7 + $0xf0] sm:$0xff]  ;;  %v548_v34 = vld [vmem:[#allocation7] sm:$0xff]  ;;  %v3635_v40 = vmov 0.0|0.0  }
  0x7b   :  { %3038 = vmatpush3.bf16.msra.mxu1 %v3035_v46  ;;  %v385_v21 = vsel %vm380_vm3, %v382_v10, %v384_v18  ;;  %v3055_v30 = vpack.c.bf16 %v596_v29, %v595_v28  ;;  %v549_v35 = vld [vmem:[#allocation7 + $0x8] sm:$0xff]  ;;  %v934_v37 = vld [vmem:[#allocation10] sm:$0xff]  ;;  %v551_v2 = vld [vmem:[#allocation7 + $0x18] sm:$0xff] }
  0x7c   :  { %2998 = vmatpush3.bf16.msra.mxu0 %v2995_v26  ;;  %3040 = vmatprep.subr.bf16.mxu1 %v3039_v55  ;;  %v594_v26 = vld [vmem:[#allocation7 + $0xd8] sm:$0xff]  ;;  %v3063_v36 = vpack.c.bf16 %v549_v35, %v548_v34  ;;  %v2147_v41 = vld [vmem:[%s4208_s2] ss:$0 sm:$0xff]  ;;  %v557_v28 = vld [vmem:[#allocation7 + $0x48] sm:$0xff] }
  0x7d   :  { %3000 = vmatprep.subr.bf16.mxu0 %v2999_v38  ;;  %v3051_v27 = vpack.c.bf16 %v594_v26, %v593_v25  ;;  %v555_v25 = vld [vmem:[#allocation7 + $0x38] sm:$0xff]  ;;  %v561_v34 = vld [vmem:[#allocation7 + $0x68] sm:$0xff] }
  0x7f   :  { %2452 = vmatmul.mubr.msk.f32.vlgmr.msra.gmra.mrb[0].mxu0 %vm193_vm2, %v178_v49  ;;  %3042 = vmatpush3.bf16.msra.mxu1 %v3039_v55 }
  0x80   :  { %3002 = vmatpush3.bf16.msra.mxu0 %v2999_v38  ;;  %2454 = vmatprep.mubr.msk.f32.mxu0 %vm193_vm2, %v181_v52  ;;  %v935_v38 = vld [vmem:[#allocation10 + $0x8] sm:$0xff] }
  0x81   :  { %3004 = vmatprep.subr.bf16.mxu0 %v3003_v51  ;;  %3044 = vmatprep.subr.bf16.mxu1 %v3043_v62  ;;  %v3879_v39 = vpack.c.bf16 %v935_v38, %v934_v37  ;;  %v563_v37 = vld [vmem:[#allocation7 + $0x78] sm:$0xff] }
  0x83   :  { %2455 = vmatmul.mubr.msk.f32.gmra.mrb[2].mxu0 %vm193_vm2, %v183_v58  ;;  %3046 = vmatpush3.bf16.msra.mxu1 %v3043_v62 }
  0x84   :  { %3006 = vmatpush3.bf16.msra.mxu0 %v3003_v51  ;;  %2473 = vmatprep.mubr.msk.f32.mxu0 %vm193_vm2, %v3826_v14  ;;  %v3027_v14 = vpack.c.bf16 %v399_v17, %v398_v16 }
  0x85   :  { %3008 = vmatprep.subr.bf16.mxu0 %v3007_v59  ;;  %3048 = vmatprep.subr.bf16.mxu1 %v3047_v4 }
  0x87   :  { %3050 = vmatpush3.bf16.msra.mxu1 %v3047_v4 }
  0x88   :  { %3010 = vmatpush3.bf16.msra.mxu0 %v3007_v59  ;;  %3052 = vmatprep.subr.bf16.mxu1 %v3051_v27 }
  0x89   :  { %3012 = vmatprep.subr.bf16.mxu0 %v3011_v1 }
  0x8b   :  { %3054 = vmatpush3.bf16.msra.mxu1 %v3051_v27  ;;  %v556_v27 = vld [vmem:[#allocation7 + $0x40] sm:$0xff] }
  0x8c   :  { %3014 = vmatpush3.bf16.msra.mxu0 %v3011_v1  ;;  %3056 = vmatprep.subr.bf16.mxu1 %v3055_v30  ;;  %v550_v1 = vld [vmem:[#allocation7 + $0x10] sm:$0xff]  ;;  %v3079_v29 = vpack.c.bf16 %v557_v28, %v556_v27  ;;  %v945_v28 = vld [vmem:[#allocation10 + $0x58] sm:$0xff] }
  0x8d   :  { %3016 = vmatprep.subr.bf16.mxu0 %v3015_v5  ;;  %v3067_v10 = vpack.c.bf16 %v551_v2, %v550_v1  ;;  %v796_v2 = vld [vmem:[#allocation7 + $0x160] sm:$0xff]  ;;  %v944_v27 = vld [vmem:[#allocation10 + $0x50] sm:$0xff] }
  0x8f   :  { %2474 = vmatmul.mubr.msk.f32.vlgmr.msra.gmra.mrb[0].mxu0 %vm193_vm2, %v3829_v20  ;;  %v387_v20 = vrot.slane %v3839_v32, 2  ;;  %3058 = vmatpush3.bf16.msra.mxu1 %v3055_v30  ;;  %v558_v30 = vld [vmem:[#allocation7 + $0x50] sm:$0xff] }
  0x90   :  { %3018 = vmatpush3.bf16.msra.mxu0 %v3015_v5  ;;  %2476 = vmatprep.mubr.msk.f32.mxu0 %vm193_vm2, %v3842_v33 }
  0x91   :  { %3020 = vmatprep.subr.bf16.mxu0 %v3019_v8  ;;  %v388_v23 = vsel %vm380_vm3, %v386_v19, %v387_v20  ;;  %v390_v24 = vsel %vm380_vm3, %v387_v20, %v389_v22  ;;  %v552_v19 = vld [vmem:[#allocation7 + $0x20] sm:$0xff]  ;;  %v553_v20 = vld [vmem:[#allocation7 + $0x28] sm:$0xff] }
  0x93   :  { %2477 = vmatmul.mubr.msk.f32.gmra.mrb[2].mxu0 %vm193_vm2, %v3839_v32  ;;  %v598_v32 = vld [vmem:[#allocation7 + $0xf8] sm:$0xff] }
  0x94   :  { %3022 = vmatpush3.bf16.msra.mxu0 %v3019_v8  ;;  %2495 = vmatprep.mubr.msk.f32.mxu0 %vm193_vm2, %v383_v15  ;;  %v3059_v33 = vpack.c.bf16 %v598_v32, %v597_v31  ;;  %v559_v31 = vld [vmem:[#allocation7 + $0x58] sm:$0xff] }
  0x95   :  { %3024 = vmatprep.subr.bf16.mxu0 %v3023_v13  ;;  %v3083_v32 = vpack.c.bf16 %v559_v31, %v558_v30  ;;  %v946_v30 = vld [vmem:[#allocation10 + $0x60] sm:$0xff]  ;;  %v947_v31 = vld [vmem:[#allocation10 + $0x68] sm:$0xff] }
  0x96   :  { %3060 = vmatprep.subr.bf16.mxu1 %v3059_v33 }
  0x97   :  { %3062 = vmatpush3.bf16.msra.mxu1 %v3059_v33  ;;  %v560_v33 = vld [vmem:[#allocation7 + $0x60] sm:$0xff] }
  0x98   :  { %3026 = vmatpush3.bf16.msra.mxu0 %v3023_v13  ;;  %3064 = vmatprep.subr.bf16.mxu1 %v3063_v36  ;;  %v3087_v35 = vpack.c.bf16 %v561_v34, %v560_v33  ;;  %v948_v33 = vld [vmem:[#allocation10 + $0x70] sm:$0xff]  ;;  %v949_v34 = vld [vmem:[#allocation10 + $0x78] sm:$0xff] }
  0x99   :  { %3028 = vmatprep.subr.bf16.mxu0 %v3027_v14 }
  0x9c   :  { %3030 = vmatpush3.bf16.msra.mxu0 %v3027_v14 }
  0x9d   :  { %3151 = vmatprep.subr.bf16.mxu0 %v3635_v40 }
  0x9f   :  { %2496 = vmatmul.mubr.msk.f32.vlgmr.msra.gmra.mrb[0].mxu0 %vm193_vm2, %v385_v21 }
  0xa0   :  { %2498 = vmatprep.mubr.msk.f32.mxu0 %vm193_vm2, %v388_v23  ;;  %3153 = vmatpush3.bf16.msra.mxu0 %v3879_v39  ;;  %v3071_v23 = vpack.c.bf16 %v553_v20, %v552_v19  ;;  %v939_v19 = vld [vmem:[#allocation10 + $0x28] sm:$0xff] }
  0xa1   :  { %3154 = vmatprep.subr.bf16.mxu0 %v3635_v40 }
  0xa3   :  { %2499 = vmatmul.mubr.msk.f32.gmra.mrb[2].mxu0 %vm193_vm2, %v390_v24  ;;  %v554_v24 = vld [vmem:[#allocation7 + $0x30] sm:$0xff] }
  0xa4   :  { %v3075_v26 = vpack.c.bf16 %v555_v25, %v554_v24  ;;  %v942_v24 = vld [vmem:[#allocation10 + $0x40] sm:$0xff]  ;;  %v943_v25 = vld [vmem:[#allocation10 + $0x48] sm:$0xff] }
 0x172   :  { %v2497_v42 = vpop.f32.mrb[0].mxu0 }
 0x173   :  { %v505_v43 = vadd.f32 %v2497_v42, %v2147_v41  ;;  %v474_v44 = vpop.f32.mrb[1].mxu0  ;;  %v785_v42 = vld [vmem:[#allocation7 + $0x108] sm:$0xff] }
 0x174   :  { %v504_v45 = vadd.f32 %v2147_v41, %v474_v44  ;;  %v786_v44 = vld [vmem:[#allocation7 + $0x110] sm:$0xff] }
 0x175   :  { %vm509_vm4 = vcmp.gt.f32.partialorder %v505_v43, 0.0  ;;  %v513_v46 = vmul.f32 0.01, %v505_v43 }
 0x176   :  { %vm508_vm5 = vcmp.gt.f32.partialorder %v504_v45, 0.0  ;;  %v512_v47 = vmul.f32 0.01, %v504_v45  ;;  %v2500_v48 = vpop.f32.mrb[2].mxu0 }
 0x177   :  { %v3887_v49 = vsel %vm509_vm4, %v505_v43, %v513_v46  ;;  %v507_v50 = vadd.f32 %v2500_v48, %v2147_v41  ;;  %v484_v51 = vpop.f32.mrb[3].mxu0  ;;  %v789_v48 = vld [vmem:[#allocation7 + $0x128] sm:$0xff] }
 0x178   :  { %v529_v52 = vrot.slane %v3887_v49, 7  ;;  %v540_v53 = vrot.slane %v3887_v49, 5  ;;  %v3891_v54 = vsel %vm508_vm5, %v504_v45, %v512_v47  ;;  %v506_v55 = vadd.f32 %v2147_v41, %v484_v51  ;;  %v784_v41 = vld [vmem:[#allocation7 + $0x100] sm:$0xff]  ;;  %v787_v45 = vld [vmem:[#allocation7 + $0x118] sm:$0xff] }
 0x179   :  { %v522_v56 = vrot.slane %v3891_v54, 1  ;;  %v528_v57 = vrot.slane %v3891_v54, 7  ;;  %vm511_vm6 = vcmp.gt.f32.partialorder %v507_v50, 0.0  ;;  %v515_v58 = vmul.f32 0.01, %v507_v50  ;;  %v788_v47 = vld [vmem:[#allocation7 + $0x120] sm:$0xff] }
 0x17a   :  { %vm510_vm7 = vcmp.gt.f32.partialorder %v506_v55, 0.0  ;;  %v514_v59 = vmul.f32 0.01, %v506_v55  ;;  %v3896_v60 = vsel %vm142_vm0, %v529_v52, %v540_v53  ;;  %v3095_v43 = vpack.c.bf16 %v785_v42, %v784_v41  ;;  %v790_v53 = vld [vmem:[#allocation7 + $0x130] sm:$0xff] }
 0x17b   :  { %v3898_v61 = vsel %vm511_vm6, %v507_v50, %v515_v58  ;;  %v3901_v62 = vsel %vm142_vm0, %v528_v57, %v529_v52  ;;  %v3904_v63 = vsel %vm142_vm0, %v522_v56, %v528_v57  ;;  %v571_v0 = vrot.slane %v3896_v60, 1  ;;  %v792_v58 = vld [vmem:[#allocation7 + $0x140] sm:$0xff] }
 0x17c   :  { %v532_v3 = vrot.slane %v3898_v61, 7  ;;  %v541_v4 = vrot.slane %v3898_v61, 5  ;;  %v3909_v5 = vsel %vm510_vm7, %v506_v55, %v514_v59  ;;  %v568_v6 = vrot.slane %v3904_v63, 1  ;;  %v791_v55 = vld [vmem:[#allocation7 + $0x138] sm:$0xff]  ;;  %v793_v59 = vld [vmem:[#allocation7 + $0x148] sm:$0xff] }
 0x17d   :  { %v523_v7 = vrot.slane %v3909_v5, 1  ;;  %v531_v8 = vrot.slane %v3909_v5, 7  ;;  %v569_v9 = vrot.slane %v3901_v62, 1  ;;  %v3099_v46 = vpack.c.bf16 %v787_v45, %v786_v44 }
 0x17e   :  { %v3916_v11 = vsel %vm142_vm0, %v532_v3, %v541_v4  ;;  %v769_v50 = vrot.slane %v3904_v63, 2  ;;  %v770_v51 = vrot.slane %v3901_v62, 2  ;;  %v3103_v52 = vpack.c.bf16 %v789_v48, %v788_v47 }
 0x17f   :  { %v570_v12 = vsel %vm173_vm1, %v568_v6, %v569_v9  ;;  %v572_v13 = vsel %vm173_vm1, %v569_v9, %v571_v0  ;;  %v3921_v15 = vsel %vm142_vm0, %v531_v8, %v532_v3  ;;  %v3924_v16 = vsel %vm142_vm0, %v523_v7, %v531_v8  ;;  %v795_v0 = vld [vmem:[#allocation7 + $0x158] sm:$0xff]  ;;  %v797_v3 = vld [vmem:[#allocation7 + $0x168] sm:$0xff]  ;;  %v798_v6 = vld [vmem:[#allocation7 + $0x170] sm:$0xff] }
 0x180   :  { %2533 = vmatprep.mubr.f32.mxu1 %v570_v12  ;;  %v573_v17 = vrot.slane %v3924_v16, 1  ;;  %v574_v14 = vrot.slane %v3921_v15, 1  ;;  %v576_v18 = vrot.slane %v3916_v11, 1  ;;  %v771_v56 = vsel %vm380_vm3, %v769_v50, %v770_v51  ;;  %v799_v7 = vld [vmem:[#allocation7 + $0x178] sm:$0xff] }
 0x181   :  { %2534 = vmatmul.mubr.f32.vlgmr.msra.gmra.mrb[0].mxu1 %v572_v13  ;;  %v3107_v57 = vpack.c.bf16 %v791_v55, %v790_v53  ;;  %v3119_v4 = vpack.c.bf16 %v797_v3, %v796_v2  ;;  %v3123_v8 = vpack.c.bf16 %v799_v7, %v798_v6  ;;  %v772_v9 = vrot.slane %v3896_v60, 2 }
 0x182   :  { %3066 = vmatpush3.bf16.msra.mxu1 %v3063_v36  ;;  %v575_v21 = vsel %vm173_vm1, %v573_v17, %v574_v14  ;;  %v577_v22 = vsel %vm173_vm1, %v574_v14, %v576_v18  ;;  %v562_v36 = vld [vmem:[#allocation7 + $0x70] sm:$0xff]  ;;  %v775_v12 = vrot.slane %v3921_v15, 2  ;;  %v777_v17 = vrot.slane %v3916_v11, 2  ;;  %v938_v11 = vld [vmem:[#allocation10 + $0x20] sm:$0xff] }
 0x183   :  { %2536 = vmatprep.mubr.f32.mxu1 %v575_v21  ;;  %3068 = vmatprep.subr.bf16.mxu1 %v3067_v10  ;;  %v3091_v38 = vpack.c.bf16 %v563_v37, %v562_v36  ;;  %v773_v13 = vsel %vm380_vm3, %v770_v51, %v772_v9  ;;  %v3954_v20 = vpack.c.bf16 %v939_v19, %v938_v11  ;;  %v940_v21 = vld [vmem:[#allocation10 + $0x30] sm:$0xff]  ;;  %v3637_v36 = vmov 0.0   ;;  %v2148_v37 = vld [vmem:[%s4210_s4] ss:$0 sm:$0xff] }
 0x184   :  { %v778_v60 = vsel %vm380_vm3, %v775_v12, %v777_v17  ;;  %2682 = vmatprep.mubr.msk.f32.mxu0 %vm3636_vm8, %v3637_v36  ;;  %v1189_v19 = vld [vmem:[#allocation8 + $0x80] sm:$0xff] }
 0x185   :  { %2537 = vmatmul.mubr.f32.gmra.mrb[2].mxu1 %v577_v22  ;;  %v941_v22 = vld [vmem:[#allocation10 + $0x38] sm:$0xff] }
 0x186   :  { %3070 = vmatpush3.bf16.msra.mxu1 %v3067_v10  ;;  %2571 = vmatprep.mubr.f32.mxu1 %v3904_v63  ;;  %v794_v63 = vld [vmem:[#allocation7 + $0x150] sm:$0xff]  ;;  %v774_v10 = vrot.slane %v3924_v16, 2 }
 0x187   :  { %3072 = vmatprep.subr.bf16.mxu1 %v3071_v23  ;;  %v3115_v1 = vpack.c.bf16 %v795_v0, %v794_v63 }
 0x188   :  { %v776_v14 = vsel %vm380_vm3, %v774_v10, %v775_v12 }
 0x18a   :  { %3074 = vmatpush3.bf16.msra.mxu1 %v3071_v23  ;;  %v3960_v23 = vpack.c.bf16 %v941_v22, %v940_v21  ;;  %v1190_v21 = vld [vmem:[#allocation8 + $0x88] sm:$0xff] }
 0x18b   :  { %3076 = vmatprep.subr.bf16.mxu1 %v3075_v26  ;;  %v3175_v22 = vpack.c.bf16 %v1190_v21, %v1189_v19 }
 0x18e   :  { %3078 = vmatpush3.bf16.msra.mxu1 %v3075_v26  ;;  %v3966_v26 = vpack.c.bf16 %v943_v25, %v942_v24  ;;  %v1191_v24 = vld [vmem:[#allocation8 + $0x90] sm:$0xff]  ;;  %v1192_v25 = vld [vmem:[#allocation8 + $0x98] sm:$0xff] }
 0x18f   :  { %3080 = vmatprep.subr.bf16.mxu1 %v3079_v29 }
 0x192   :  { %3082 = vmatpush3.bf16.msra.mxu1 %v3079_v29  ;;  %v3972_v29 = vpack.c.bf16 %v945_v28, %v944_v27  ;;  %v3179_v27 = vpack.c.bf16 %v1192_v25, %v1191_v24  ;;  %v1193_v28 = vld [vmem:[#allocation8 + $0xa0] sm:$0xff] }
 0x193   :  { %3084 = vmatprep.subr.bf16.mxu1 %v3083_v32 }
 0x196   :  { %3086 = vmatpush3.bf16.msra.mxu1 %v3083_v32  ;;  %v3978_v32 = vpack.c.bf16 %v947_v31, %v946_v30  ;;  %v1194_v30 = vld [vmem:[#allocation8 + $0xa8] sm:$0xff] }
 0x197   :  { %3088 = vmatprep.subr.bf16.mxu1 %v3087_v35  ;;  %v3183_v31 = vpack.c.bf16 %v1194_v30, %v1193_v28 }
 0x19a   :  { %3090 = vmatpush3.bf16.msra.mxu1 %v3087_v35  ;;  %v3983_v35 = vpack.c.bf16 %v949_v34, %v948_v33  ;;  %v1195_v33 = vld [vmem:[#allocation8 + $0xb0] sm:$0xff]  ;;  %v1196_v34 = vld [vmem:[#allocation8 + $0xb8] sm:$0xff] }
 0x19b   :  { %3092 = vmatprep.subr.bf16.mxu1 %v3091_v38 }
 0x19e   :  { %3094 = vmatpush3.bf16.msra.mxu1 %v3091_v38 }
 0x19f   :  { %3096 = vmatprep.subr.bf16.mxu1 %v3095_v43 }
 0x1a1   :  { %2572 = vmatmul.mubr.f32.vlgmr.msra.gmra.mrb[0].mxu1 %v3901_v62  ;;  %v3111_v62 = vpack.c.bf16 %v793_v59, %v792_v58 }
 0x1a2   :  { %2574 = vmatprep.mubr.f32.mxu1 %v3924_v16  ;;  %3098 = vmatpush3.bf16.msra.mxu1 %v3095_v43  ;;  %v936_v16 = vld [vmem:[#allocation10 + $0x10] sm:$0xff] }
 0x1a3   :  { %3100 = vmatprep.subr.bf16.mxu1 %v3099_v46 }
 0x1a5   :  { %2575 = vmatmul.mubr.f32.gmra.mrb[2].mxu1 %v3921_v15  ;;  %v937_v15 = vld [vmem:[#allocation10 + $0x18] sm:$0xff] }
 0x1a6   :  { %3102 = vmatpush3.bf16.msra.mxu1 %v3099_v46  ;;  %2609 = vmatprep.mubr.f32.mxu1 %v771_v56  ;;  %v3948_v18 = vpack.c.bf16 %v937_v15, %v936_v16 }
 0x1a7   :  { %3104 = vmatprep.subr.bf16.mxu1 %v3103_v52 }
 0x1a8   :  { %3156 = vmatpush3.bf16.msra.mxu0 %v3948_v18 }
 0x1a9   :  { %3157 = vmatprep.subr.bf16.mxu0 %v3635_v40 }
 0x1aa   :  { %3106 = vmatpush3.bf16.msra.mxu1 %v3103_v52 }
 0x1ab   :  { %3108 = vmatprep.subr.bf16.mxu1 %v3107_v57 }
 0x1ac   :  { %3159 = vmatpush3.bf16.msra.mxu0 %v3954_v20 }
 0x1ad   :  { %3160 = vmatprep.subr.bf16.mxu0 %v3635_v40 }
 0x1ae   :  { %3110 = vmatpush3.bf16.msra.mxu1 %v3107_v57 }
 0x1af   :  { %3112 = vmatprep.subr.bf16.mxu1 %v3111_v62 }
 0x1b0   :  { %3162 = vmatpush3.bf16.msra.mxu0 %v3960_v23 }
 0x1b1   :  { %3163 = vmatprep.subr.bf16.mxu0 %v3635_v40 }
 0x1b2   :  { %3114 = vmatpush3.bf16.msra.mxu1 %v3111_v62 }
 0x1b3   :  { %3116 = vmatprep.subr.bf16.mxu1 %v3115_v1 }
 0x1b4   :  { %3165 = vmatpush3.bf16.msra.mxu0 %v3966_v26 }
 0x1b5   :  { %3166 = vmatprep.subr.bf16.mxu0 %v3635_v40 }
 0x1b6   :  { %3118 = vmatpush3.bf16.msra.mxu1 %v3115_v1 }
 0x1b7   :  { %3120 = vmatprep.subr.bf16.mxu1 %v3119_v4 }
 0x1b8   :  { %3168 = vmatpush3.bf16.msra.mxu0 %v3972_v29 }
 0x1b9   :  { %3169 = vmatprep.subr.bf16.mxu0 %v3635_v40 }
 0x1ba   :  { %3122 = vmatpush3.bf16.msra.mxu1 %v3119_v4 }
 0x1bb   :  { %3124 = vmatprep.subr.bf16.mxu1 %v3123_v8 }
 0x1bc   :  { %3171 = vmatpush3.bf16.msra.mxu0 %v3978_v32 }
 0x1bd   :  { %3172 = vmatprep.subr.bf16.mxu0 %v3635_v40 }
 0x1be   :  { %3126 = vmatpush3.bf16.msra.mxu1 %v3123_v8 }
 0x1bf   :  { %3127 = vmatprep.subr.bf16.mxu1 %v3635_v40 }
 0x1c0   :  { %3174 = vmatpush3.bf16.msra.mxu0 %v3983_v35 }
 0x1c1   :  { %2610 = vmatmul.mubr.f32.vlgmr.msra.gmra.mrb[0].mxu1 %v773_v13  ;;  %3271 = vmatprep.subr.bf16.mxu0 %v3635_v40 }
 0x1c2   :  { %2612 = vmatprep.mubr.f32.mxu1 %v776_v14  ;;  %3129 = vmatpush3.bf16.msra.mxu1 %v3879_v39 }
 0x1c3   :  { %3130 = vmatprep.subr.bf16.mxu1 %v3635_v40 }
 0x1c5   :  { %2613 = vmatmul.mubr.f32.gmra.mrb[2].mxu1 %v778_v60 }
 0x1c6   :  { %3132 = vmatpush3.bf16.msra.mxu1 %v3948_v18  ;;  %2647 = vmatprep.mubr.msk.f32.mxu1 %vm3636_vm8, %v3637_v36 }
 0x1c7   :  { %3133 = vmatprep.subr.bf16.mxu1 %v3635_v40 }
 0x1ca   :  { %3135 = vmatpush3.bf16.msra.mxu1 %v3954_v20 }
 0x1cb   :  { %3136 = vmatprep.subr.bf16.mxu1 %v3635_v40 }
 0x1ce   :  { %3138 = vmatpush3.bf16.msra.mxu1 %v3960_v23 }
 0x1cf   :  { %3139 = vmatprep.subr.bf16.mxu1 %v3635_v40 }
 0x1d2   :  { %3141 = vmatpush3.bf16.msra.mxu1 %v3966_v26 }
 0x1d3   :  { %3142 = vmatprep.subr.bf16.mxu1 %v3635_v40 }
 0x1d6   :  { %3144 = vmatpush3.bf16.msra.mxu1 %v3972_v29 }
 0x1d7   :  { %3145 = vmatprep.subr.bf16.mxu1 %v3635_v40 }
 0x1da   :  { %3147 = vmatpush3.bf16.msra.mxu1 %v3978_v32 }
 0x1db   :  { %3148 = vmatprep.subr.bf16.mxu1 %v3635_v40 }
 0x1de   :  { %3150 = vmatpush3.bf16.msra.mxu1 %v3983_v35 }
 0x1df   :  { %3176 = vmatprep.subr.bf16.mxu1 %v3175_v22 }
 0x294   :  { %v2611_v38 = vpop.f32.mrb[0].mxu1 }
 0x295   :  { %v897_v41 = vadd.f32 %v2611_v38, %v2148_v37  ;;  %v866_v42 = vpop.f32.mrb[1].mxu1  ;;  %v1197_v38 = vld [vmem:[#allocation8 + $0xc0] sm:$0xff] }
 0x296   :  { %v896_v43 = vadd.f32 %v2148_v37, %v866_v42 }
 0x297   :  { %vm901_vm9 = vcmp.gt.f32.partialorder %v897_v41, 0.0  ;;  %v905_v44 = vmul.f32 0.01, %v897_v41 }
 0x298   :  { %vm900_vm10 = vcmp.gt.f32.partialorder %v896_v43, 0.0  ;;  %v904_v45 = vmul.f32 0.01, %v896_v43  ;;  %v2614_v46 = vpop.f32.mrb[2].mxu1 }
 0x299   :  { %v3996_v47 = vsel %vm901_vm9, %v897_v41, %v905_v44  ;;  %v899_v48 = vadd.f32 %v2614_v46, %v2148_v37  ;;  %v876_v50 = vpop.f32.mrb[3].mxu1  ;;  %v1198_v41 = vld [vmem:[#allocation8 + $0xc8] sm:$0xff]  ;;  %v1200_v44 = vld [vmem:[#allocation8 + $0xd8] sm:$0xff]  ;;  %v1201_v46 = vld [vmem:[#allocation8 + $0xe0] sm:$0xff] }
 0x29a   :  { %v3998_v51 = vsel %vm900_vm10, %v896_v43, %v904_v45  ;;  %v898_v52 = vadd.f32 %v2148_v37, %v876_v50  ;;  %v922_v53 = vmul.f32 %v3996_v47, %v3996_v47  ;;  %v3187_v37 = vpack.c.bf16 %v1196_v34, %v1195_v33  ;;  %v1199_v43 = vld [vmem:[#allocation8 + $0xd0] sm:$0xff] }
 0x29b   :  { %v921_v55 = vmul.f32 %v3998_v51, %v3998_v51  ;;  %vm903_vm11 = vcmp.gt.f32.partialorder %v899_v48, 0.0  ;;  %v907_v56 = vmul.f32 0.01, %v899_v48  ;;  %v912_v58 = vadd.f32 %v3996_v47, %v3998_v51  ;;  %v1203_v50 = vld [vmem:[#allocation8 + $0xf0] sm:$0xff] }
 0x29c   :  { %vm902_vm12 = vcmp.gt.f32.partialorder %v898_v52, 0.0  ;;  %v906_v57 = vmul.f32 0.01, %v898_v52  ;;  %v3191_v42 = vpack.c.bf16 %v1198_v41, %v1197_v38  ;;  %v3195_v45 = vpack.c.bf16 %v1200_v44, %v1199_v43  ;;  %v1156_v41 = vld [vmem:[#allocation8 + $0x10] sm:$0xff] }
 0x29d   :  { %v4006_v59 = vsel %vm903_vm11, %v899_v48, %v907_v56  ;;  %v925_v63 = vadd.f32 %v922_v53, %v921_v55  ;;  %v1202_v48 = vld [vmem:[#allocation8 + $0xe8] sm:$0xff]  ;;  %v1204_v53 = vld [vmem:[#allocation8 + $0xf8] sm:$0xff]  ;;  %v1154_v56 = vld [vmem:[#allocation8] sm:$0xff] }
 0x29e   :  { %v4008_v62 = vsel %vm902_vm12, %v898_v52, %v906_v57  ;;  %v924_v2 = vmul.f32 %v4006_v59, %v4006_v59  ;;  %v3199_v52 = vpack.c.bf16 %v1202_v48, %v1201_v46  ;;  %v3203_v55 = vpack.c.bf16 %v1204_v53, %v1203_v50  ;;  %v1155_v57 = vld [vmem:[#allocation8 + $0x8] sm:$0xff] }
 0x29f   :  { %v913_v0 = vadd.f32 %v912_v58, %v4008_v62  ;;  %v923_v1 = vmul.f32 %v4008_v62, %v4008_v62  ;;  %v4034_v58 = vpack.c.bf16 %v1155_v57, %v1154_v56 }
 0x2a1   :  { %v914_v3 = vadd.f32 %v913_v0, %v4006_v59  ;;  %v926_v4 = vadd.f32 %v925_v63, %v923_v1 }
 0x2a3   :  { %v915_v6 = vrot.slane %v914_v3, 4  ;;  %v927_v7 = vadd.f32 %v926_v4, %v924_v2 }
 0x2a5   :  { %v916_v8 = vadd.f32 %v915_v6, %v914_v3  ;;  %v928_v9 = vrot.slane %v927_v7, 4 }
 0x2a7   :  { %v917_v10 = vrot.slane %v916_v8, 2  ;;  %v929_v12 = vadd.f32 %v928_v9, %v927_v7  ;;  %v1103_v9 = vlaneseq }
 0x2a9   :  { %v918_v13 = vadd.f32 %v917_v10, %v916_v8  ;;  %v930_v17 = vrot.slane %v929_v12, 2  ;;  %v1104_v10 = vshrl.u32 %v1103_v9, 7 }
 0x2ab   :  { %v919_v14 = vrot.slane %v918_v13, 1  ;;  %v931_v60 = vadd.f32 %v930_v17, %v929_v12  ;;  %v1095_v12 = vld [vmem:[%s4211_s5] sm:$0x1] }
 0x2ad   :  { %v920_v16 = vadd.f32 %v919_v14, %v918_v13  ;;  %v932_v15 = vrot.slane %v931_v60, 1  ;;  %v4040_v13 = vsub.s32 0, %v1104_v10  ;;  %v1158_v10 = vld [vmem:[#allocation8 + $0x20] sm:$0xff] }
 0x2af   :  { %2648 = vmatmul.mubr.f32.vlgmr.msra.gmra.mrb[4].mxu1 %v920_v16  ;;  %v933_v11 = vadd.f32 %v932_v15, %v931_v60  ;;  %v1099_v60 = vld [vmem:[%s4212_s6] sm:$0x1] }
 0x2b0   :  { %3178 = vmatpush3.bf16.msra.mxu1 %v3175_v22 }
 0x2b1   :  { %2683 = vmatmul.mubr.f32.vlgmr.msra.gmra.mrb[4].mxu0 %v933_v11  ;;  %3180 = vmatprep.subr.bf16.mxu1 %v3179_v27 }
 0x2b2   :  { %3273 = vmatpush3.bf16.msra.mxu0 %v3879_v39  ;;  %2831 = vmatprep.mubr.msk.f32.mxu0 %vm3636_vm8, %v3637_v36 }
 0x2b3   :  { %3274 = vmatprep.subr.bf16.mxu0 %v3635_v40 }
 0x2b4   :  { %3182 = vmatpush3.bf16.msra.mxu1 %v3179_v27 }
 0x2b5   :  { %3184 = vmatprep.subr.bf16.mxu1 %v3183_v31 }
 0x2b6   :  { %3276 = vmatpush3.bf16.msra.mxu0 %v3948_v18 }
 0x2b7   :  { %3277 = vmatprep.subr.bf16.mxu0 %v3635_v40 }
 0x2b8   :  { %3186 = vmatpush3.bf16.msra.mxu1 %v3183_v31 }
 0x2b9   :  { %3188 = vmatprep.subr.bf16.mxu1 %v3187_v37 }
 0x2ba   :  { %3279 = vmatpush3.bf16.msra.mxu0 %v3954_v20 }
 0x2bb   :  { %3280 = vmatprep.subr.bf16.mxu0 %v3635_v40 }
 0x2bc   :  { %3190 = vmatpush3.bf16.msra.mxu1 %v3187_v37 }
 0x2bd   :  { %3192 = vmatprep.subr.bf16.mxu1 %v3191_v42 }
 0x2be   :  { %3282 = vmatpush3.bf16.msra.mxu0 %v3960_v23 }
 0x2bf   :  { %3283 = vmatprep.subr.bf16.mxu0 %v3635_v40 }
 0x2c0   :  { %3194 = vmatpush3.bf16.msra.mxu1 %v3191_v42  ;;  %v1157_v42 = vld [vmem:[#allocation8 + $0x18] sm:$0xff] }
 0x2c1   :  { %3196 = vmatprep.subr.bf16.mxu1 %v3195_v45  ;;  %v3211_v53 = vpack.c.bf16 %v1157_v42, %v1156_v41  ;;  %v1166_v41 = vld [vmem:[#allocation8 + $0x60] sm:$0xff]  ;;  %v1167_v42 = vld [vmem:[#allocation8 + $0x68] sm:$0xff] }
 0x2c2   :  { %3285 = vmatpush3.bf16.msra.mxu0 %v3966_v26 }
 0x2c3   :  { %3286 = vmatprep.subr.bf16.mxu0 %v3635_v40 }
 0x2c4   :  { %3198 = vmatpush3.bf16.msra.mxu1 %v3195_v45 }
 0x2c5   :  { %3200 = vmatprep.subr.bf16.mxu1 %v3199_v52 }
 0x2c6   :  { %3288 = vmatpush3.bf16.msra.mxu0 %v3972_v29 }
 0x2c7   :  { %3289 = vmatprep.subr.bf16.mxu0 %v3635_v40 }
 0x2c8   :  { %3202 = vmatpush3.bf16.msra.mxu1 %v3199_v52 }
 0x2c9   :  { %3204 = vmatprep.subr.bf16.mxu1 %v3203_v55 }
 0x2ca   :  { %3291 = vmatpush3.bf16.msra.mxu0 %v3978_v32 }
 0x2cb   :  { %3292 = vmatprep.subr.bf16.mxu0 %v3635_v40 }
 0x2cc   :  { %3206 = vmatpush3.bf16.msra.mxu1 %v3203_v55 }
 0x2cd   :  { %3208 = vmatprep.subr.bf16.mxu1 %v4034_v58 }
 0x2ce   :  { %3294 = vmatpush3.bf16.msra.mxu0 %v3983_v35 }
 0x2cf   :  { %3295 = vmatprep.subr.bf16.mxu0 %v3635_v40 }
 0x382   :  { %v1016_v63 = vpop.f32.mrb[4].mxu1 }
 0x383   :  { %v1021_v0 = vmul.f32 0.001953125, %v1016_v63  ;;  %v2649_v1 = vpop.f32.mrb[5].mxu1 }
 0x384   :  { %v1088_v2 = vpop.f32.mrb[4].mxu0 }
 0x385   :  { %v1093_v3 = vmul.f32 %v1021_v0, %v1021_v0  ;;  %v1092_v4 = vmul.f32 0.001953125, %v1088_v2  ;;  %v2684_v6 = vpop.f32.mrb[5].mxu0 }
 0x387   :  { %v1094_v7 = vsub.f32 %v1092_v4, %v1093_v3 }
 0x389   :  { %v1096_v8 = vadd.f32 1e-05, %v1094_v7 }
 0x38b   :  { %3459 = vrsqrt.f32 %v1096_v8 }
 0x395   :  { %v3460_v17 = vpop.eup %3459 }
 0x396   :  { %v1098_v14 = vmul.f32 %v3460_v17, %v1095_v12  ;;  %v1159_v12 = vld [vmem:[#allocation8 + $0x28] sm:$0xff] }
 0x398   :  { %v1100_v16 = vmul.f32 %v1098_v14, %v1021_v0  ;;  %v1106_v15 = vrot.slane %v1098_v14, %v4040_v13 }
 0x39a   :  { %v1101_v11 = vsub.f32 %v1099_v60, %v1100_v16  ;;  %v1108_v19 = vmul.f32 %v1106_v15, %v3998_v51  ;;  %v1109_v22 = vmul.f32 %v1106_v15, %v3996_v47  ;;  %v1110_v24 = vmul.f32 %v1106_v15, %v4008_v62 }
 0x39b   :  { %v1111_v25 = vmul.f32 %v1106_v15, %v4006_v59 }
 0x39c   :  { %v1116_v21 = vrot.slane %v1101_v11, %v4040_v13 }
 0x39e   :  { %v1118_v27 = vadd.f32 %v1116_v21, %v1108_v19  ;;  %v1119_v28 = vadd.f32 %v1116_v21, %v1109_v22  ;;  %v1120_v30 = vadd.f32 %v1116_v21, %v1110_v24  ;;  %v1121_v31 = vadd.f32 %v1116_v21, %v1111_v25 }
 0x39f   :  { %v3215_v22 = vpack.c.bf16 %v1159_v12, %v1158_v10  ;;  %v1405_v12 = vld [vmem:[#allocation8 + $0x178] sm:$0xff] }
 0x3a0   :  { %v1122_v33 = vmax.f32 %v1118_v27, 0.0  ;;  %v1123_v34 = vmax.f32 %v1119_v28, 0.0  ;;  %v1124_v37 = vmax.f32 %v1120_v30, 0.0  ;;  %v1125_v38 = vmax.f32 %v1121_v31, 0.0  ;;  %v1160_v27 = vld [vmem:[#allocation8 + $0x30] sm:$0xff]  ;;  %v1161_v28 = vld [vmem:[#allocation8 + $0x38] sm:$0xff] }
 0x3a1   :  { %v1162_v30 = vld [vmem:[#allocation8 + $0x40] sm:$0xff]  ;;  %v1163_v31 = vld [vmem:[#allocation8 + $0x48] sm:$0xff] }
 0x3a2   :  { %v1128_v43 = vrot.slane %v1122_v33, 1  ;;  %v1134_v51 = vrot.slane %v1122_v33, 7  ;;  %v1135_v44 = vrot.slane %v1123_v34, 7  ;;  %v1146_v45 = vrot.slane %v1123_v34, 5  ;;  %v1164_v34 = vld [vmem:[#allocation8 + $0x50] sm:$0xff] }
 0x3a3   :  { %v1129_v46 = vrot.slane %v1124_v37, 1  ;;  %v1137_v47 = vrot.slane %v1124_v37, 7  ;;  %v1138_v48 = vrot.slane %v1125_v38, 7  ;;  %v1147_v62 = vrot.slane %v1125_v38, 5  ;;  %v1165_v37 = vld [vmem:[#allocation8 + $0x58] sm:$0xff] }
 0x3a4   :  { %v4052_v59 = vsel %vm142_vm0, %v1134_v51, %v1135_v44  ;;  %v1150_v50 = vsel %vm142_vm0, %v1128_v43, %v1134_v51  ;;  %v1152_v52 = vsel %vm142_vm0, %v1135_v44, %v1146_v45  ;;  %v3223_v33 = vpack.c.bf16 %v1163_v31, %v1162_v30  ;;  %v1168_v51 = vld [vmem:[#allocation8 + $0x70] sm:$0xff]  ;;  %v1169_v44 = vld [vmem:[#allocation8 + $0x78] sm:$0xff] }
 0x3a5   :  { %v1174_v55 = vrot.slane %v1150_v50, 1  ;;  %v1175_v56 = vrot.slane %v4052_v59, 1  ;;  %v1177_v57 = vrot.slane %v1152_v52, 1  ;;  %v1378_v63 = vrot.slane %v1152_v52, 2 }
 0x3a6   :  { %v4058_v0 = vsel %vm142_vm0, %v1137_v47, %v1138_v48  ;;  %v4061_v1 = vsel %vm142_vm0, %v1129_v46, %v1137_v47  ;;  %v1153_v2 = vsel %vm142_vm0, %v1138_v48, %v1147_v62  ;;  %v1375_v3 = vrot.slane %v1150_v50, 2  ;;  %v1390_v46 = vld [vmem:[#allocation8 + $0x100] sm:$0xff]  ;;  %v1391_v47 = vld [vmem:[#allocation8 + $0x108] sm:$0xff]  ;;  %v1392_v62 = vld [vmem:[#allocation8 + $0x110] sm:$0xff] }
 0x3a7   :  { %v1176_v4 = vsel %vm173_vm1, %v1174_v55, %v1175_v56  ;;  %v1178_v6 = vsel %vm173_vm1, %v1175_v56, %v1177_v57  ;;  %v1179_v7 = vrot.slane %v4061_v1, 1  ;;  %v1180_v8 = vrot.slane %v4058_v0, 1  ;;  %v1395_v55 = vld [vmem:[#allocation8 + $0x128] sm:$0xff]  ;;  %v1396_v57 = vld [vmem:[#allocation8 + $0x130] sm:$0xff] }
 0x3a8   :  { %2717 = vmatprep.mubr.f32.mxu1 %v1176_v4  ;;  %v1182_v9 = vrot.slane %v1153_v2, 1  ;;  %v1376_v17 = vrot.slane %v4052_v59, 2  ;;  %v1380_v14 = vrot.slane %v4061_v1, 2  ;;  %v1381_v60 = vrot.slane %v4058_v0, 2  ;;  %v1399_v4 = vld [vmem:[#allocation8 + $0x148] sm:$0xff] }
 0x3a9   :  { %2718 = vmatmul.mubr.f32.vlgmr.msra.gmra.mrb[6].mxu1 %v1178_v6  ;;  %v1181_v16 = vsel %vm173_vm1, %v1179_v7, %v1180_v8  ;;  %v1383_v15 = vrot.slane %v1153_v2, 2  ;;  %v3227_v38 = vpack.c.bf16 %v1165_v37, %v1164_v34  ;;  %v3231_v43 = vpack.c.bf16 %v1167_v42, %v1166_v41  ;;  %v1400_v7 = vld [vmem:[#allocation8 + $0x150] sm:$0xff] }
 0x3aa   :  { %3210 = vmatpush3.bf16.msra.mxu1 %v4034_v58  ;;  %2720 = vmatprep.mubr.f32.mxu1 %v1181_v16  ;;  %v1183_v11 = vsel %vm173_vm1, %v1180_v8, %v1182_v9  ;;  %v1377_v19 = vsel %vm380_vm3, %v1375_v3, %v1376_v17  ;;  %v4076_v21 = vsel %vm380_vm3, %v1376_v17, %v1378_v63  ;;  %v1397_v63 = vld [vmem:[#allocation8 + $0x138] sm:$0xff]  ;;  %v1398_v3 = vld [vmem:[#allocation8 + $0x140] sm:$0xff]  ;;  %v1403_v9 = vld [vmem:[#allocation8 + $0x168] sm:$0xff] }
 0x3ab   :  { %3212 = vmatprep.subr.bf16.mxu1 %v3211_v53  ;;  %v4079_v24 = vsel %vm380_vm3, %v1380_v14, %v1381_v60  ;;  %v4082_v25 = vsel %vm380_vm3, %v1381_v60, %v1383_v15  ;;  %v3219_v58 = vpack.c.bf16 %v1161_v28, %v1160_v27  ;;  %v3235_v45 = vpack.c.bf16 %v1169_v44, %v1168_v51  ;;  %v1402_v8 = vld [vmem:[#allocation8 + $0x160] sm:$0xff] }
 0x3ac   :  { %v3239_v48 = vpack.c.bf16 %v1391_v47, %v1390_v46  ;;  %v3251_v2 = vpack.c.bf16 %v1397_v63, %v1396_v57  ;;  %v3255_v6 = vpack.c.bf16 %v1399_v4, %v1398_v3  ;;  %v3263_v10 = vpack.c.bf16 %v1403_v9, %v1402_v8  ;;  %v2149_v14 = vld [vmem:[%s4214_s8] ss:$0 sm:$0xff]  ;;  %v1783_v63 = vld [vmem:[#allocation11 + $0x88] sm:$0xff]  ;;  %v1785_v3 = vld [vmem:[#allocation11 + $0x98] sm:$0xff] }
 0x3ad   :  { %2721 = vmatmul.mubr.f32.gmra.mrb[8].mxu1 %v1183_v11  ;;  %v1782_v57 = vld [vmem:[#allocation11 + $0x80] sm:$0xff]  ;;  %v1792_v9 = vld [vmem:[#allocation11 + $0xd0] sm:$0xff] }
 0x3ae   :  { %3214 = vmatpush3.bf16.msra.mxu1 %v3211_v53  ;;  %2755 = vmatprep.mubr.f32.mxu1 %v1150_v50  ;;  %v1393_v50 = vld [vmem:[#allocation8 + $0x118] sm:$0xff]  ;;  %v1394_v53 = vld [vmem:[#allocation8 + $0x120] sm:$0xff] }
 0x3af   :  { %3216 = vmatprep.subr.bf16.mxu1 %v3215_v22  ;;  %v3243_v52 = vpack.c.bf16 %v1393_v50, %v1392_v62  ;;  %v3247_v56 = vpack.c.bf16 %v1395_v55, %v1394_v53  ;;  %v1786_v4 = vld [vmem:[#allocation11 + $0xa0] sm:$0xff] }
 0x3b2   :  { %3218 = vmatpush3.bf16.msra.mxu1 %v3215_v22 }
 0x3b3   :  { %3220 = vmatprep.subr.bf16.mxu1 %v3219_v58 }
 0x3b6   :  { %3222 = vmatpush3.bf16.msra.mxu1 %v3219_v58 }
 0x3b7   :  { %3224 = vmatprep.subr.bf16.mxu1 %v3223_v33 }
 0x3ba   :  { %3226 = vmatpush3.bf16.msra.mxu1 %v3223_v33 }
 0x3bb   :  { %3228 = vmatprep.subr.bf16.mxu1 %v3227_v38 }
 0x3be   :  { %3230 = vmatpush3.bf16.msra.mxu1 %v3227_v38 }
 0x3bf   :  { %3232 = vmatprep.subr.bf16.mxu1 %v3231_v43 }
 0x3c2   :  { %3234 = vmatpush3.bf16.msra.mxu1 %v3231_v43 }
 0x3c3   :  { %3236 = vmatprep.subr.bf16.mxu1 %v3235_v45 }
 0x3c6   :  { %3238 = vmatpush3.bf16.msra.mxu1 %v3235_v45 }
 0x3c7   :  { %3240 = vmatprep.subr.bf16.mxu1 %v3239_v48 }
 0x3c9   :  { %2756 = vmatmul.mubr.f32.vlgmr.msra.gmra.mrb[6].mxu1 %v4052_v59  ;;  %v1401_v59 = vld [vmem:[#allocation8 + $0x158] sm:$0xff] }
 0x3ca   :  { %2758 = vmatprep.mubr.f32.mxu1 %v4061_v1  ;;  %3242 = vmatpush3.bf16.msra.mxu1 %v3239_v48  ;;  %v3259_v1 = vpack.c.bf16 %v1401_v59, %v1400_v7  ;;  %v1789_v7 = vld [vmem:[#allocation11 + $0xb8] sm:$0xff]  ;;  %v1790_v59 = vld [vmem:[#allocation11 + $0xc0] sm:$0xff] }
 0x3cb   :  { %3244 = vmatprep.subr.bf16.mxu1 %v3243_v52 }
 0x3cd   :  { %2759 = vmatmul.mubr.f32.gmra.mrb[8].mxu1 %v4058_v0  ;;  %v1404_v0 = vld [vmem:[#allocation8 + $0x170] sm:$0xff] }
 0x3ce   :  { %3246 = vmatpush3.bf16.msra.mxu1 %v3243_v52  ;;  %2793 = vmatprep.mubr.f32.mxu1 %v1377_v19  ;;  %v3267_v17 = vpack.c.bf16 %v1405_v12, %v1404_v0  ;;  %v1794_v0 = vld [vmem:[#allocation11 + $0xe0] sm:$0xff] }
 0x3cf   :  { %3248 = vmatprep.subr.bf16.mxu1 %v3247_v56 }
 0x3d2   :  { %3250 = vmatpush3.bf16.msra.mxu1 %v3247_v56 }
 0x3d3   :  { %3252 = vmatprep.subr.bf16.mxu1 %v3251_v2 }
 0x3d6   :  { %3254 = vmatpush3.bf16.msra.mxu1 %v3251_v2  ;;  %v1784_v2 = vld [vmem:[#allocation11 + $0x90] sm:$0xff] }
 0x3d7   :  { %3256 = vmatprep.subr.bf16.mxu1 %v3255_v6 }
 0x3da   :  { %3258 = vmatpush3.bf16.msra.mxu1 %v3255_v6  ;;  %v1787_v6 = vld [vmem:[#allocation11 + $0xa8] sm:$0xff] }
 0x3db   :  { %3260 = vmatprep.subr.bf16.mxu1 %v3259_v1 }
 0x3de   :  { %3262 = vmatpush3.bf16.msra.mxu1 %v3259_v1  ;;  %v1791_v1 = vld [vmem:[#allocation11 + $0xc8] sm:$0xff] }
 0x3df   :  { %3264 = vmatprep.subr.bf16.mxu1 %v3263_v10  ;;  %v3335_v8 = vpack.c.bf16 %v1791_v1, %v1790_v59 }
 0x3e2   :  { %3266 = vmatpush3.bf16.msra.mxu1 %v3263_v10  ;;  %v1793_v10 = vld [vmem:[#allocation11 + $0xd8] sm:$0xff] }
 0x3e3   :  { %3268 = vmatprep.subr.bf16.mxu1 %v3267_v17  ;;  %v3339_v12 = vpack.c.bf16 %v1793_v10, %v1792_v9 }
 0x3e6   :  { %3270 = vmatpush3.bf16.msra.mxu1 %v3267_v17  ;;  %v1795_v17 = vld [vmem:[#allocation11 + $0xe8] sm:$0xff] }
 0x3e9   :  { %2794 = vmatmul.mubr.f32.vlgmr.msra.gmra.mrb[6].mxu1 %v4076_v21 }
 0x3ea   :  { %2796 = vmatprep.mubr.f32.mxu1 %v4079_v24 }
 0x3ed   :  { %2797 = vmatmul.mubr.f32.gmra.mrb[8].mxu1 %v4082_v25 }
 0x4bc   :  { %v2795_v60 = vpop.f32.mrb[6].mxu1 }
 0x4bd   :  { %v1503_v16 = vadd.f32 %v2795_v60, %v2149_v14  ;;  %v1472_v15 = vpop.f32.mrb[7].mxu1  ;;  %v1796_v60 = vld [vmem:[#allocation11 + $0xf0] sm:$0xff] }
 0x4be   :  { %v1502_v11 = vadd.f32 %v2149_v14, %v1472_v15 }
 0x4bf   :  { %vm1507_vm13 = vcmp.gt.f32.partialorder %v1503_v16, 0.0  ;;  %v1511_v19 = vmul.f32 0.01, %v1503_v16 }
 0x4c0   :  { %vm1506_vm14 = vcmp.gt.f32.partialorder %v1502_v11, 0.0  ;;  %v1510_v22 = vmul.f32 0.01, %v1502_v11  ;;  %v2798_v27 = vpop.f32.mrb[8].mxu1 }
 0x4c1   :  { %v1505_v28 = vadd.f32 %v2798_v27, %v2149_v14  ;;  %v1482_v58 = vpop.f32.mrb[9].mxu1  ;;  %v4093_v21 = vsel %vm1507_vm13, %v1503_v16, %v1511_v19  ;;  %v1797_v16 = vld [vmem:[#allocation11 + $0xf8] sm:$0xff]  ;;  %v1748_v19 = vld [vmem:[#allocation11 + $0x8] sm:$0xff] }
 0x4c2   :  { %v4095_v24 = vsel %vm1506_vm14, %v1502_v11, %v1510_v22  ;;  %v1504_v25 = vadd.f32 %v2149_v14, %v1482_v58  ;;  %v1528_v45 = vmul.f32 %v4093_v21, %v4093_v21  ;;  %v3343_v14 = vpack.c.bf16 %v1795_v17, %v1794_v0  ;;  %v1747_v11 = vld [vmem:[#allocation11] sm:$0xff] }
 0x4c3   :  { %v1513_v30 = vmul.f32 0.01, %v1505_v28  ;;  %v1518_v33 = vadd.f32 %v4093_v21, %v4095_v24  ;;  %vm1509_vm2 = vcmp.gt.f32.partialorder %v1505_v28, 0.0  ;;  %v1527_v46 = vmul.f32 %v4095_v24, %v4095_v24 }
 0x4c4   :  { %vm1508_vm15 = vcmp.gt.f32.partialorder %v1504_v25, 0.0  ;;  %v1512_v31 = vmul.f32 0.01, %v1504_v25  ;;  %v3347_v15 = vpack.c.bf16 %v1797_v16, %v1796_v60  ;;  %v4130_v22 = vpack.c.bf16 %v1748_v19, %v1747_v11  ;;  %v1752_v11 = vld [vmem:[#allocation11 + $0x28] sm:$0xff] }
 0x4c5   :  { %v4102_v38 = vsel %vm1509_vm2, %v1505_v28, %v1513_v30  ;;  %v1531_v50 = vadd.f32 %v1528_v45, %v1527_v46 }
 0x4c6   :  { %v4099_v34 = vsel %vm1508_vm15, %v1504_v25, %v1512_v31  ;;  %v1530_v53 = vmul.f32 %v4102_v38, %v4102_v38 }
 0x4c7   :  { %v1519_v37 = vadd.f32 %v1518_v33, %v4099_v34  ;;  %v1529_v48 = vmul.f32 %v4099_v34, %v4099_v34 }
 0x4c9   :  { %v1520_v41 = vadd.f32 %v1519_v37, %v4102_v38  ;;  %v1532_v52 = vadd.f32 %v1531_v50, %v1529_v48 }
 0x4cb   :  { %v1521_v42 = vrot.slane %v1520_v41, 4  ;;  %v1533_v55 = vadd.f32 %v1532_v52, %v1530_v53 }
 0x4cd   :  { %v1522_v43 = vadd.f32 %v1521_v42, %v1520_v41  ;;  %v1534_v56 = vrot.slane %v1533_v55, 4  ;;  %v1684_v42 = vld [vmem:[%s4215_s9] sm:$0x1] }
 0x4cf   :  { %v1523_v51 = vrot.slane %v1522_v43, 2 }
 0x4d1   :  { %v1524_v44 = vadd.f32 %v1523_v51, %v1522_v43 }
 0x4d3   :  { %v1525_v47 = vrot.slane %v1524_v44, 1 }
 0x4d5   :  { %v1526_v62 = vadd.f32 %v1525_v47, %v1524_v44  ;;  %v1688_v44 = vld [vmem:[%s4216_s10] sm:$0x1] }
 0x4d7   :  { %2832 = vmatmul.mubr.f32.vlgmr.msra.gmra.mrb[6].mxu0 %v1526_v62 }
 0x4d8   :  { %3297 = vmatpush3.bf16.msra.mxu0 %v3879_v39  ;;  %2866 = vmatprep.mubr.msk.f32.mxu0 %vm3636_vm8, %v3637_v36  ;;  %v1535_v39 = vadd.f32 %v1534_v56, %v1533_v55 }
 0x4d9   :  { %3298 = vmatprep.subr.bf16.mxu0 %v3635_v40 }
 0x4da   :  { %v1536_v36 = vrot.slane %v1535_v39, 2 }
 0x4dc   :  { %3300 = vmatpush3.bf16.msra.mxu0 %v3948_v18  ;;  %v1537_v18 = vadd.f32 %v1536_v36, %v1535_v39 }
 0x4dd   :  { %3301 = vmatprep.subr.bf16.mxu0 %v3635_v40 }
 0x4e0   :  { %3303 = vmatpush3.bf16.msra.mxu0 %v3954_v20  ;;  %v1538_v20 = vrot.slane %v1537_v18, 1 }
 0x4e1   :  { %3304 = vmatprep.subr.bf16.mxu0 %v3635_v40 }
 0x4e4   :  { %3306 = vmatpush3.bf16.msra.mxu0 %v3960_v23  ;;  %v1539_v23 = vadd.f32 %v1538_v20, %v1537_v18 }
 0x4e5   :  { %3307 = vmatprep.subr.bf16.mxu0 %v3635_v40 }
 0x4e8   :  { %3309 = vmatpush3.bf16.msra.mxu0 %v3966_v26  ;;  %v3319_v26 = vpack.c.bf16 %v1783_v63, %v1782_v57 }
 0x4e9   :  { %3310 = vmatprep.subr.bf16.mxu0 %v3635_v40 }
 0x4ec   :  { %3312 = vmatpush3.bf16.msra.mxu0 %v3972_v29  ;;  %v3323_v29 = vpack.c.bf16 %v1785_v3, %v1784_v2 }
 0x4ed   :  { %3313 = vmatprep.subr.bf16.mxu0 %v3635_v40 }
 0x4f0   :  { %3315 = vmatpush3.bf16.msra.mxu0 %v3978_v32  ;;  %v3327_v32 = vpack.c.bf16 %v1787_v6, %v1786_v4 }
 0x4f1   :  { %3316 = vmatprep.subr.bf16.mxu0 %v3635_v40  ;;  %v1788_v40 = vld [vmem:[#allocation11 + $0xb0] sm:$0xff] }
 0x4f4   :  { %3318 = vmatpush3.bf16.msra.mxu0 %v3983_v35  ;;  %v3331_v35 = vpack.c.bf16 %v1789_v7, %v1788_v40 }
 0x4f5   :  { %3320 = vmatprep.subr.bf16.mxu0 %v3319_v26 }
 0x4f7   :  { %2867 = vmatmul.mubr.f32.vlgmr.msra.gmra.mrb[8].mxu0 %v1539_v23 }
 0x4f8   :  { %3322 = vmatpush3.bf16.msra.mxu0 %v3319_v26  ;;  %v1749_v26 = vld [vmem:[#allocation11 + $0x10] sm:$0xff] }
 0x4f9   :  { %3324 = vmatprep.subr.bf16.mxu0 %v3323_v29 }
 0x4fc   :  { %3326 = vmatpush3.bf16.msra.mxu0 %v3323_v29 }
 0x4fd   :  { %3328 = vmatprep.subr.bf16.mxu0 %v3327_v32 }
 0x500   :  { %3330 = vmatpush3.bf16.msra.mxu0 %v3327_v32 }
 0x501   :  { %3332 = vmatprep.subr.bf16.mxu0 %v3331_v35 }
 0x504   :  { %3334 = vmatpush3.bf16.msra.mxu0 %v3331_v35 }
 0x505   :  { %3336 = vmatprep.subr.bf16.mxu0 %v3335_v8 }
 0x508   :  { %3338 = vmatpush3.bf16.msra.mxu0 %v3335_v8 }
 0x509   :  { %3340 = vmatprep.subr.bf16.mxu0 %v3339_v12 }
 0x50c   :  { %3342 = vmatpush3.bf16.msra.mxu0 %v3339_v12 }
 0x50d   :  { %3344 = vmatprep.subr.bf16.mxu0 %v3343_v14 }
 0x510   :  { %3346 = vmatpush3.bf16.msra.mxu0 %v3343_v14 }
 0x511   :  { %3348 = vmatprep.subr.bf16.mxu0 %v3347_v15 }
 0x514   :  { %3350 = vmatpush3.bf16.msra.mxu0 %v3347_v15  ;;  %v1751_v15 = vld [vmem:[#allocation11 + $0x20] sm:$0xff] }
 0x515   :  { %3352 = vmatprep.subr.bf16.mxu0 %v4130_v22 }
 0x5aa   :  { %v1606_v27 = vpop.f32.mrb[6].mxu0 }
 0x5ab   :  { %v2833_v28 = vpop.f32.mrb[7].mxu0  ;;  %v1610_v58 = vmul.f32 0.001953125, %v1606_v27 }
 0x5ad   :  { %v1682_v30 = vmul.f32 %v1610_v58, %v1610_v58 }
 0x5ca   :  { %v1677_v25 = vpop.f32.mrb[8].mxu0 }
 0x5cb   :  { %v1681_v31 = vmul.f32 0.001953125, %v1677_v25  ;;  %v2868_v33 = vpop.f32.mrb[9].mxu0 }
 0x5cd   :  { %v1683_v37 = vsub.f32 %v1681_v31, %v1682_v30 }
 0x5cf   :  { %v1685_v41 = vadd.f32 1e-05, %v1683_v37  ;;  %v3359_v37 = vpack.c.bf16 %v1752_v11, %v1751_v15 }
 0x5d1   :  { %3461 = vrsqrt.f32 %v1685_v41 }
 0x5db   :  { %v3462_v43 = vpop.eup %3461 }
 0x5dc   :  { %v1687_v51 = vmul.f32 %v3462_v43, %v1684_v42  ;;  %v1753_v43 = vld [vmem:[#allocation11 + $0x30] sm:$0xff] }
 0x5de   :  { %v1689_v45 = vmul.f32 %v1687_v51, %v1610_v58  ;;  %v1695_v46 = vrot.slane %v1687_v51, %v4040_v13  ;;  %v1754_v51 = vld [vmem:[#allocation11 + $0x38] sm:$0xff] }
 0x5e0   :  { %v1690_v47 = vsub.f32 %v1688_v44, %v1689_v45  ;;  %v1697_v48 = vmul.f32 %v1695_v46, %v4095_v24  ;;  %v1698_v50 = vmul.f32 %v1695_v46, %v4093_v21  ;;  %v1699_v52 = vmul.f32 %v1695_v46, %v4099_v34  ;;  %v1750_v34 = vld [vmem:[#allocation11 + $0x18] sm:$0xff]  ;;  %v1755_v44 = vld [vmem:[#allocation11 + $0x40] sm:$0xff]  ;;  %v1756_v45 = vld [vmem:[#allocation11 + $0x48] sm:$0xff] }
 0x5e1   :  { %v1700_v53 = vmul.f32 %v1695_v46, %v4102_v38  ;;  %v3355_v40 = vpack.c.bf16 %v1750_v34, %v1749_v26  ;;  %v3367_v46 = vpack.c.bf16 %v1756_v45, %v1755_v44  ;;  %v1989_v26 = vld [vmem:[#allocation11 + $0x130] sm:$0xff]  ;;  %v1990_v34 = vld [vmem:[#allocation11 + $0x138] sm:$0xff] }
 0x5e2   :  { %v1705_v62 = vrot.slane %v1690_v47, %v4040_v13  ;;  %v1757_v47 = vld [vmem:[#allocation11 + $0x50] sm:$0xff] }
 0x5e4   :  { %v1707_v55 = vadd.f32 %v1705_v62, %v1697_v48  ;;  %v1708_v56 = vadd.f32 %v1705_v62, %v1698_v50  ;;  %v1709_v39 = vadd.f32 %v1705_v62, %v1699_v52  ;;  %v1710_v36 = vadd.f32 %v1705_v62, %v1700_v53  ;;  %v1758_v48 = vld [vmem:[#allocation11 + $0x58] sm:$0xff]  ;;  %v1759_v50 = vld [vmem:[#allocation11 + $0x60] sm:$0xff]  ;;  %v1760_v52 = vld [vmem:[#allocation11 + $0x68] sm:$0xff] }
 0x5e5   :  { %v3371_v62 = vpack.c.bf16 %v1758_v48, %v1757_v47  ;;  %v3375_v53 = vpack.c.bf16 %v1760_v52, %v1759_v50 }
 0x5e6   :  { %v1711_v18 = vadd.f32 %v1707_v55, %v3891_v54  ;;  %v1712_v20 = vadd.f32 %v1708_v56, %v3887_v49  ;;  %v1713_v23 = vadd.f32 %v1709_v39, %v3909_v5  ;;  %v1714_v24 = vadd.f32 %v1710_v36, %v3898_v61  ;;  %v1761_v55 = vld [vmem:[#allocation11 + $0x70] sm:$0xff]  ;;  %v1762_v56 = vld [vmem:[#allocation11 + $0x78] sm:$0xff]  ;;  %v1983_v36 = vld [vmem:[#allocation11 + $0x100] sm:$0xff] }
 0x5e7   :  { %v3379_v39 = vpack.c.bf16 %v1762_v56, %v1761_v55 }
 0x5e8   :  { %v1715_v57 = vmax.f32 %v1711_v18, 0.0  ;;  %v1716_v13 = vmax.f32 %v1712_v20, 0.0  ;;  %v1717_v63 = vmax.f32 %v1713_v23, 0.0  ;;  %v1718_v21 = vmax.f32 %v1714_v24, 0.0  ;;  %v1984_v18 = vld [vmem:[#allocation11 + $0x108] sm:$0xff]  ;;  %v1985_v23 = vld [vmem:[#allocation11 + $0x110] sm:$0xff] }
 0x5e9   :  { %v3383_v20 = vpack.c.bf16 %v1984_v18, %v1983_v36  ;;  %v1986_v24 = vld [vmem:[#allocation11 + $0x118] sm:$0xff] }
 0x5ea   :  { %v1721_v2 = vrot.slane %v1715_v57, 1  ;;  %v1727_v38 = vrot.slane %v1715_v57, 7  ;;  %v1728_v3 = vrot.slane %v1716_v13, 7  ;;  %v1739_v29 = vrot.slane %v1716_v13, 5  ;;  %v1987_v13 = vld [vmem:[#allocation11 + $0x120] sm:$0xff] }
 0x5eb   :  { %v1722_v4 = vrot.slane %v1717_v63, 1  ;;  %v1730_v6 = vrot.slane %v1717_v63, 7  ;;  %v1731_v32 = vrot.slane %v1718_v21, 7  ;;  %v1740_v54 = vrot.slane %v1718_v21, 5  ;;  %v1988_v63 = vld [vmem:[#allocation11 + $0x128] sm:$0xff] }
 0x5ec   :  { %v4150_v49 = vsel %vm142_vm0, %v1727_v38, %v1728_v3  ;;  %v1743_v5 = vsel %vm142_vm0, %v1721_v2, %v1727_v38  ;;  %v1745_v61 = vsel %vm142_vm0, %v1728_v3, %v1739_v29  ;;  %v3387_v57 = vpack.c.bf16 %v1986_v24, %v1985_v23  ;;  %v1991_v38 = vld [vmem:[#allocation11 + $0x140] sm:$0xff]  ;;  %v1992_v3 = vld [vmem:[#allocation11 + $0x148] sm:$0xff] }
 0x5ed   :  { %v1767_v7 = vrot.slane %v1743_v5, 1  ;;  %v1768_v35 = vrot.slane %v4150_v49, 1  ;;  %v1770_v59 = vrot.slane %v1745_v61, 1  ;;  %v1971_v1 = vrot.slane %v1745_v61, 2  ;;  %v1997_v61 = vld [vmem:[#allocation11 + $0x170] sm:$0xff] }
 0x5ee   :  { %v4156_v8 = vsel %vm142_vm0, %v1730_v6, %v1731_v32  ;;  %v4159_v9 = vsel %vm142_vm0, %v1722_v4, %v1730_v6  ;;  %v1746_v10 = vsel %vm142_vm0, %v1731_v32, %v1740_v54  ;;  %v1968_v0 = vrot.slane %v1743_v5, 2  ;;  %v1993_v4 = vld [vmem:[#allocation11 + $0x150] sm:$0xff]  ;;  %v1994_v6 = vld [vmem:[#allocation11 + $0x158] sm:$0xff]  ;;  %v1995_v54 = vld [vmem:[#allocation11 + $0x160] sm:$0xff] }
 0x5ef   :  { %v1769_v12 = vsel %vm173_vm1, %v1767_v7, %v1768_v35  ;;  %v1771_v17 = vsel %vm173_vm1, %v1768_v35, %v1770_v59  ;;  %v1772_v14 = vrot.slane %v4159_v9, 1  ;;  %v1773_v60 = vrot.slane %v4156_v8, 1  ;;  %v2150_v35 = vld [vmem:[%s4219_s13] ss:$0 sm:$0xff]  ;;  %s3595_s13 = scalar_lea.vmem %s2121_s17, 512 }
 0x5f0   :  { %2901 = vmatprep.mubr.f32.mxu0 %v1769_v12  ;;  %v1775_v16 = vrot.slane %v1746_v10, 1  ;;  %v1969_v19 = vrot.slane %v4150_v49, 2  ;;  %v1973_v27 = vrot.slane %v4159_v9, 2  ;;  %v1974_v28 = vrot.slane %v4156_v8, 2  ;;  %p3596_p6 = scmp.ne.s32.totalorder %s2121_s17, %s3595_s13  ;;  %p3601_p8 = scmp.lt.s32.totalorder %s3595_s13, %s3595_s13 }
 0x5f1   :  { %2902 = vmatmul.mubr.f32.vlgmr.msra.gmra.mrb[10].mxu0 %v1771_v17  ;;  %v1774_v58 = vsel %vm173_vm1, %v1772_v14, %v1773_v60  ;;  %v1976_v25 = vrot.slane %v1746_v10, 2  ;;  %v3391_v21 = vpack.c.bf16 %v1988_v63, %v1987_v13  ;;  %v3395_v2 = vpack.c.bf16 %v1990_v34, %v1989_v26 }
 0x5f2   :  { %3354 = vmatpush3.bf16.msra.mxu0 %v4130_v22  ;;  %2904 = vmatprep.mubr.f32.mxu0 %v1774_v58  ;;  %v1776_v30 = vsel %vm173_vm1, %v1773_v60, %v1775_v16  ;;  %v1970_v31 = vsel %vm380_vm3, %v1968_v0, %v1969_v19  ;;  %v4174_v33 = vsel %vm380_vm3, %v1969_v19, %v1971_v1  ;;  %p3602_p9 = por %p3601_p8, %p3600_p7 }
 0x5f3   :  { %3356 = vmatprep.subr.bf16.mxu0 %v3355_v40  ;;  %v4177_v41 = vsel %vm380_vm3, %v1973_v27, %v1974_v28  ;;  %v4180_v42 = vsel %vm380_vm3, %v1974_v28, %v1976_v25  ;;  %v3363_v22 = vpack.c.bf16 %v1754_v51, %v1753_v43  ;;  %v3399_v29 = vpack.c.bf16 %v1992_v3, %v1991_v38 }
 0x5f4   :  { %v3403_v32 = vpack.c.bf16 %v1994_v6, %v1993_v4  ;;  %p3603_p10 = pnand %p3602_p9, %p3596_p6 }
 0x5f5   :  { %2905 = vmatmul.mubr.f32.gmra.mrb[12].mxu0 %v1776_v30 }
 0x5f6   :  { %3358 = vmatpush3.bf16.msra.mxu0 %v3355_v40  ;;  %2939 = vmatprep.mubr.f32.mxu0 %v1743_v5  ;;  %v1998_v40 = vld [vmem:[#allocation11 + $0x178] sm:$0xff] }
 0x5f7   :  { %3360 = vmatprep.subr.bf16.mxu0 %v3359_v37  ;;  %v3411_v7 = vpack.c.bf16 %v1998_v40, %v1997_v61 }
 0x5fa   :  { %3362 = vmatpush3.bf16.msra.mxu0 %v3359_v37 }
 0x5fb   :  { %3364 = vmatprep.subr.bf16.mxu0 %v3363_v22 }
 0x5fe   :  { %3366 = vmatpush3.bf16.msra.mxu0 %v3363_v22 }
 0x5ff   :  { %3368 = vmatprep.subr.bf16.mxu0 %v3367_v46 }
 0x602   :  { %3370 = vmatpush3.bf16.msra.mxu0 %v3367_v46 }
 0x603   :  { %3372 = vmatprep.subr.bf16.mxu0 %v3371_v62 }
 0x606   :  { %3374 = vmatpush3.bf16.msra.mxu0 %v3371_v62 }
 0x607   :  { %3376 = vmatprep.subr.bf16.mxu0 %v3375_v53 }
 0x60a   :  { %3378 = vmatpush3.bf16.msra.mxu0 %v3375_v53 }
 0x60b   :  { %3380 = vmatprep.subr.bf16.mxu0 %v3379_v39 }
 0x60e   :  { %3382 = vmatpush3.bf16.msra.mxu0 %v3379_v39 }
 0x60f   :  { %3384 = vmatprep.subr.bf16.mxu0 %v3383_v20 }
 0x611   :  { %2940 = vmatmul.mubr.f32.vlgmr.msra.gmra.mrb[10].mxu0 %v4150_v49  ;;  %v1996_v49 = vld [vmem:[#allocation11 + $0x168] sm:$0xff] }
 0x612   :  { %2942 = vmatprep.mubr.f32.mxu0 %v4159_v9  ;;  %3386 = vmatpush3.bf16.msra.mxu0 %v3383_v20  ;;  %v3407_v5 = vpack.c.bf16 %v1996_v49, %v1995_v54 }
 0x613   :  { %3388 = vmatprep.subr.bf16.mxu0 %v3387_v57 }
 0x615   :  { %2943 = vmatmul.mubr.f32.gmra.mrb[12].mxu0 %v4156_v8 }
 0x616   :  { %3390 = vmatpush3.bf16.msra.mxu0 %v3387_v57  ;;  %2977 = vmatprep.mubr.f32.mxu0 %v1970_v31 }
 0x617   :  { %3392 = vmatprep.subr.bf16.mxu0 %v3391_v21 }
 0x61a   :  { %3394 = vmatpush3.bf16.msra.mxu0 %v3391_v21 }
 0x61b   :  { %3396 = vmatprep.subr.bf16.mxu0 %v3395_v2 }
 0x61e   :  { %3398 = vmatpush3.bf16.msra.mxu0 %v3395_v2 }
 0x61f   :  { %3400 = vmatprep.subr.bf16.mxu0 %v3399_v29 }
 0x622   :  { %3402 = vmatpush3.bf16.msra.mxu0 %v3399_v29 }
 0x623   :  { %3404 = vmatprep.subr.bf16.mxu0 %v3403_v32 }
 0x626   :  { %3406 = vmatpush3.bf16.msra.mxu0 %v3403_v32 }
 0x627   :  { %3408 = vmatprep.subr.bf16.mxu0 %v3407_v5 }
 0x62a   :  { %3410 = vmatpush3.bf16.msra.mxu0 %v3407_v5 }
 0x62b   :  { %3412 = vmatprep.subr.bf16.mxu0 %v3411_v7 }
 0x62e   :  { %3414 = vmatpush3.bf16.msra.mxu0 %v3411_v7 }
 0x631   :  { %2978 = vmatmul.mubr.f32.vlgmr.msra.gmra.mrb[10].mxu0 %v4174_v33 }
 0x632   :  { %2980 = vmatprep.mubr.f32.mxu0 %v4177_v41 }
 0x635   :  { %2981 = vmatmul.mubr.f32.gmra.mrb[12].mxu0 %v4180_v42 }
 0x704   :  { %v2979_v59 = vpop.f32.mrb[10].mxu0 }
 0x705   :  { %v2096_v1 = vadd.f32 %v2979_v59, %v2150_v35  ;;  %v2065_v8 = vpop.f32.mrb[11].mxu0 }
 0x706   :  { %v2095_v9 = vadd.f32 %v2150_v35, %v2065_v8 }
 0x707   :  { %vm2100_vm0 = vcmp.gt.f32.partialorder %v2096_v1, 0.0  ;;  %v2104_v10 = vmul.f32 0.01, %v2096_v1 }
 0x708   :  { %vm2099_vm1 = vcmp.gt.f32.partialorder %v2095_v9, 0.0  ;;  %v2103_v0 = vmul.f32 0.01, %v2095_v9  ;;  %v2982_v12 = vpop.f32.mrb[12].mxu0 }
 0x709   :  { %v2108_v17 = vsel %vm2100_vm0, %v2096_v1, %v2104_v10  ;;  %v2098_v14 = vadd.f32 %v2982_v12, %v2150_v35  ;;  %v2075_v60 = vpop.f32.mrb[13].mxu0 }
 0x70a   :  { %2112 = vst [vmem:[#allocation13 + $0x8] sm:$0xff] %v2108_v17  ;;  %v2107_v16 = vsel %vm2099_vm1, %v2095_v9, %v2103_v0  ;;  %v2097_v15 = vadd.f32 %v2150_v35, %v2075_v60 }
 0x70b   :  { %2111 = vst [vmem:[#allocation13] sm:$0xff] %v2107_v16  ;;  %vm2102_vm3 = vcmp.gt.f32.partialorder %v2098_v14, 0.0  ;;  %v2106_v11 = vmul.f32 0.01, %v2098_v14 }
 0x70c   :  { %vm2101_vm4 = vcmp.gt.f32.partialorder %v2097_v15, 0.0  ;;  %v2105_v19 = vmul.f32 0.01, %v2097_v15 }
 0x70d   :  { %v2110_v27 = vsel %vm2102_vm3, %v2098_v14, %v2106_v11 }
 0x70e   :  { %2114 = vst [vmem:[#allocation13 + $0x18] sm:$0xff] %v2110_v27  ;;  %v2109_v28 = vsel %vm2101_vm4, %v2097_v15, %v2105_v19 }
 0x70f   :  { %2113 = vst [vmem:[#allocation13 + $0x10] sm:$0xff] %v2109_v28 }
 0x710   :  { %3606 = shalt.err (!%p3603_p10)
}
 0x711   :  { %s3607_s24 = scalar_lea.hbm %s4220_s14, 512 }
 0x712   :  { %p3608_p11 = scmp.ne.s32.totalorder %s4220_s14, %s3607_s24  ;;  %p3611_p12 = scmp.lt.u32.totalorder %s3607_s24, %s4220_s14 }
 0x714   :  { %p3613_p13 = pnand %p3611_p12, %p3608_p11 }
 0x716   :  { %3616 = shalt.err (!%p3613_p13)
}
 0x717   :  { %2126 = dma.vmem_to_hbm [thread:$0]  %s2121_s17, 512, %s4220_s14, [#allocation4], %s3629_s25, %s3629_s25, %s3630_s26  }
 0x718   :  { %3625 = dma.done.wait [#allocation4], 512  }
 0x719   :  { %3626 = vsyncadd [#allocation4], 4294966784 }
 0x71a   :  { %2130 = vsyncpa [#allocation3], 1 }
 0x71b   :  { %2131 = vsyncpa [#allocation6], 1 }
 0x71c   :  { %2132 = vsyncpa [#allocation9], 1 }
 0x71d   :  { %2133 = vsyncpa [#allocation12], 1 }
 0x71e   :  { %2134 = vsyncpa [#allocation4], 1 }

</bundles_post_ra>
